<compile_context>
chip_gen: v5e
topology: v5e:2x2
jax: 0.10.0
libtpu: 0.0.40
codegen_flags: <defaults>
</compile_context>

<pallas_src>
import functools
import math

import numpy as np
import jax
import jax.numpy as jnp
from jax.experimental import pallas as pl
from jax.experimental.pallas import tpu as pltpu

# ---------------- config (mirrors VRDAG.__init__) ----------------
X_DIM = 4            # len(attr_col)
H_DIM = 32           # h_dim (== time_embed_size)
Z_DIM = 16           # z_dim
ENC_HID = 32         # enc_hid_dim
POST_HID = 32        # post_hid_dim
PRIOR_HID = 32       # prior_hid_dim
ATTR_HID = 32        # attr_hid_dim
BERN_HID = 32        # bernoulli_hid_dim
N_MIX = 4            # num_mix_component
MAX_N = 16           # max_num_nodes
N_NODES = 12         # n_nodes passed to forward()
POS_W = 2.0          # pos_weight for BCEWithLogitsLoss
EPS = 1e-6           # config['eps']
KN = N_MIX * MAX_N   # 64

GAUSS_DIFF = 0.5 * math.log(2.0 * math.pi)

VMEM = pltpu.MemorySpace.VMEM

# ---------------- packed-slab layouts (static, shared by init + kernel) -----
# w32 slab: (H_DIM, 1280); every segment starts on a 128-lane boundary.
W32_LANES   = 1280
OFF_GIN2    = 0      # width 32
OFF_HH      = 128    # width 224: [post_w1h|prior_w1|topo_w1h|attr_w1h|gru_whh]
OFF_PXH     = 384    # width 128: [post_w1x|gru_wihx]
OFF_PZH     = 512    # width 160: [topo_w1z|attr_w1z|gru_wihz]
OFF_POSTMS  = 768    # width 32 : [post mean|std]
OFF_PRIORMS = 896    # width 32 : [prior mean|std]
OFF_TOPOTA  = 1024   # width 128: [log_theta|log_alpha]
OFF_ATTRMS  = 1152   # width 8  : [attr mean|std]
HH_W, PXH_W, PZH_W = 224, 128, 160

# bias slab: (1, 768)
B_LANES      = 768
BOFF_GIN1    = 0     # 32
BOFF_GIN2    = 32    # 32
BOFF_HH      = 64    # 224: [post_b1|prior_b1|topo_b1|zeros(attr)|gru_bhh]
BOFF_PXH     = 288   # 128: [zeros(post)|gru_bih]
BOFF_POSTMS  = 416   # 32
BOFF_PRIORMS = 448   # 32
BOFF_PHIZ    = 480   # 32
BOFF_TOPOTA  = 512   # 128
BOFF_ATTRMS  = 640   # 8
BOFF_ATTRB1  = 648   # 32 (added AFTER the gen_adj matmul)

# misc slab: (64, 256) — odd fan-ins + mixture constants.
MISC_ROWS, MISC_LANES = 64, 256
MOFF_GIN1 = 0     # rows 0:4,   width 32
MOFF_PHIZ = 32    # rows 0:16,  width 32
MOFF_BLK  = 64    # rows 0:64,  width 4   (sum over j within k-block)
MOFF_BLKM = 68    # rows 0:64,  width 4   (same, columns j>=n_nodes zeroed)
MOFF_SEL  = 72    # rows 0:64,  width 16  (sum over k for each j)
MOFF_BLKT = 128   # rows 0:4,   width 64  (broadcast per-k value across block)
MOFF_SELT = 192   # rows 0:16,  width 64  (tile A over the k-blocks)


# ------------------------------------------------------------------
# Fused forward kernel
# ------------------------------------------------------------------
def _vrdag_fused_kernel(a_ref, x_ref, h_ref, tvec_ref, noise_ref,
                        w32_ref, bias_ref, misc_ref,
                        h_out_ref, loss_ref, *, nn, pos_w, eps):
    f32 = jnp.float32

    def dot(a, b):
        return jnp.dot(a, b, preferred_element_type=f32)

    def relu(v):
        return jnp.maximum(v, 0.0)

    A = a_ref[...]                 # (N, N)
    X = x_ref[...]                 # (N, X_DIM)
    h = h_ref[...]                 # (N, H_DIM)

    # ---- phi_x : 2-layer GIN encoder (eps=0):  h1 = relu((X + A X) W1 + b1)
    gin_w1 = misc_ref[0:X_DIM, MOFF_GIN1:MOFF_GIN1 + ENC_HID]
    gin_b1 = bias_ref[:, BOFF_GIN1:BOFF_GIN1 + ENC_HID]
    h1 = relu(dot(X + dot(A, X), gin_w1) + gin_b1)
    gin_w2 = w32_ref[:, OFF_GIN2:OFF_GIN2 + H_DIM]
    gin_b2 = bias_ref[:, BOFF_GIN2:BOFF_GIN2 + H_DIM]
    phi_x = dot(h1 + dot(A, h1), gin_w2) + gin_b2 + tvec_ref[...]   # += t_vec

    # ---- merged same-LHS heads (one MXU push each)
    # hh  = h     @ [post_w1h|prior_w1|topo_w1h|attr_w1h|gru_whh] + merged bias
    # pxh = phi_x @ [post_w1x|gru_wihx]                           + [0|gru_bih]
    hh = dot(h, w32_ref[:, OFF_HH:OFF_HH + HH_W]) \
        + bias_ref[:, BOFF_HH:BOFF_HH + HH_W]                        # (N, 224)
    pxh = dot(phi_x, w32_ref[:, OFF_PXH:OFF_PXH + PXH_W]) \
        + bias_ref[:, BOFF_PXH:BOFF_PXH + PXH_W]                     # (N, 128)

    # ---- Posterior(phi_x, h)  (split-weight concat; merged mean|std head)
    ph = relu(pxh[:, 0:H_DIM] + hh[:, 0:H_DIM])
    post = dot(ph, w32_ref[:, OFF_POSTMS:OFF_POSTMS + 2 * Z_DIM]) \
        + bias_ref[:, BOFF_POSTMS:BOFF_POSTMS + 2 * Z_DIM]           # (N, 2Z)
    post_mean = post[:, :Z_DIM]
    post_std = jax.nn.softplus(post[:, Z_DIM:])

    # ---- Prior(h)
    pr = relu(hh[:, H_DIM:2 * H_DIM])
    prior = dot(pr, w32_ref[:, OFF_PRIORMS:OFF_PRIORMS + 2 * Z_DIM]) \
        + bias_ref[:, BOFF_PRIORMS:BOFF_PRIORMS + 2 * Z_DIM]         # (N, 2Z)
    prior_mean = prior[:, :Z_DIM]
    prior_std = jax.nn.softplus(prior[:, Z_DIM:])

    # ---- reparameterized sample + phi_z
    z_t = noise_ref[...] * post_std + post_mean
    phiz_w = misc_ref[0:Z_DIM, MOFF_PHIZ:MOFF_PHIZ + H_DIM]
    phiz_b = bias_ref[:, BOFF_PHIZ:BOFF_PHIZ + H_DIM]
    phi_z = relu(dot(z_t, phiz_w) + phiz_b)

    # pzh = phi_z @ [topo_w1z|attr_w1z|gru_wihz]  (biases handled elsewhere)
    pzh = dot(phi_z, w32_ref[:, OFF_PZH:OFF_PZH + PZH_W])            # (N, 160)

    # ---- MixtureBernoulli topo decoder (merged theta|alpha head)
    th = relu(pzh[:, 0:H_DIM] + hh[:, 2 * H_DIM:3 * H_DIM])
    ta = dot(th, w32_ref[:, OFF_TOPOTA:OFF_TOPOTA + 2 * KN]) \
        + bias_ref[:, BOFF_TOPOTA:BOFF_TOPOTA + 2 * KN]              # (N, 128)
    log_theta = ta[:, :KN]           # (N, K*N), k-block outer
    log_alpha = ta[:, KN:]           # (N, K*N)

    blk = misc_ref[:, MOFF_BLK:MOFF_BLK + N_MIX]                     # (K*N, K)
    blkm = misc_ref[:, MOFF_BLKM:MOFF_BLKM + N_MIX]                  # col-masked
    sel = misc_ref[:, MOFF_SEL:MOFF_SEL + MAX_N]                     # (K*N, N)
    blkt = misc_ref[0:N_MIX, MOFF_BLKT:MOFF_BLKT + KN]               # (K, K*N)
    selt = misc_ref[0:MAX_N, MOFF_SELT:MOFF_SELT + KN]               # (N, K*N)

    # mixture weights: softmax_k( sum_j log_alpha[:, j, k] )
    a_sum = dot(log_alpha, blk)                                      # (N, K)
    a_max = jnp.max(a_sum, axis=1, keepdims=True)
    a_exp = jnp.exp(a_sum - a_max)
    a_den = jnp.sum(a_exp, axis=1, keepdims=True)
    alpha = a_exp * pl.reciprocal(a_den, approx=True)                # softmax over K
    real_log_alpha = (a_sum - a_max) - jnp.log(a_den)                # log_softmax over K

    # gen_adj = sum_k alpha[:,k] * sigmoid(theta[:,:,k])
    alpha_flat = dot(alpha, blkt)                                    # (N, K*N)
    gen_adj = dot(alpha_flat * jax.nn.sigmoid(log_theta), sel)       # (N, N)

    # ---- AttrDecoder(phi_z, h, gen_adj), re-associated:
    #   gen_adj@phi_z@Wz + gen_adj@h@Wh + b  ==  gen_adj @ (phi_z@Wz + h@Wh) + b
    attr_b1 = bias_ref[:, BOFF_ATTRB1:BOFF_ATTRB1 + ATTR_HID]
    ah = relu(dot(gen_adj, pzh[:, H_DIM:2 * H_DIM] + hh[:, 3 * H_DIM:4 * H_DIM])
              + attr_b1)
    attr_out = dot(ah, w32_ref[:, OFF_ATTRMS:OFF_ATTRMS + 2 * X_DIM]) \
        + bias_ref[:, BOFF_ATTRMS:BOFF_ATTRMS + 2 * X_DIM]           # (N, 2*X_DIM)
    attr_mean = attr_out[:, :X_DIM]
    attr_std = jax.nn.softplus(attr_out[:, X_DIM:])

    # ---- GRU cell over cat([phi_x, phi_z])  (gate order r, z, n)
    gi = pxh[:, H_DIM:PXH_W] + pzh[:, 2 * H_DIM:PZH_W]               # (N, 3H), has bih
    gh = hh[:, 4 * H_DIM:HH_W]                                       # (N, 3H), has bhh
    r = jax.nn.sigmoid(gi[:, :H_DIM] + gh[:, :H_DIM])
    zg = jax.nn.sigmoid(gi[:, H_DIM:2 * H_DIM] + gh[:, H_DIM:2 * H_DIM])
    ng = jnp.tanh(gi[:, 2 * H_DIM:] + r * gh[:, 2 * H_DIM:])
    h_out_ref[...] = (1.0 - zg) * ng + zg * h

    # ---- validity masks (nn is static; column mask is baked into blkm)
    row_mask = (jax.lax.broadcasted_iota(jnp.int32, (MAX_N, 1), 0) < nn).astype(f32)
    col_mask = (jax.lax.broadcasted_iota(jnp.int32, (1, MAX_N), 1) < nn).astype(f32)

    # ---- KLD loss: 0.5 * sum KL(Normal(post) || Normal(prior))
    kl = (jnp.log(prior_std) - jnp.log(post_std)
          + (post_std * post_std + (post_mean - prior_mean) ** 2)
          * (0.5 * pl.reciprocal(prior_std * prior_std, approx=True)) - 0.5)
    kld = 0.5 * jnp.sum(kl, keepdims=True)                           # (1, 1)

    # ---- attr loss: attr_optimize == 'kld' (deterministic Gaussian NLL, sum)
    # TODO(synk): the 'mse' / 'sce' attr_optimize variants (which sample from the
    # predicted Gaussian) are not implemented; 'kld' (deterministic) is used.
    s = attr_std + eps
    attr_l = jnp.sum(jnp.log(s) + GAUSS_DIFF
                     + (X - attr_mean) ** 2 * (0.5 * pl.reciprocal(s * s, approx=True)),
                     keepdims=True)                                  # (1, 1)

    # ---- structure loss: mixture-Bernoulli NLL (rows/cols < nn) + MSE recon
    # NOTE: the reference's masked_fill results are discarded (out-of-place), so
    # the neg-sampling / theta masking is a no-op and intentionally omitted.
    A_flat = dot(A, selt)                                            # A tiled over k
    bce = (pos_w * A_flat * jax.nn.softplus(-log_theta)
           + (1.0 - A_flat) * jax.nn.softplus(log_theta))            # BCEWithLogits
    adj_loss = dot(bce, blkm)                                        # (N, K): sum j<nn
    v = real_log_alpha - adj_loss
    v_max = jnp.max(v, axis=1, keepdims=True)
    lse = v_max + jnp.log(jnp.sum(jnp.exp(v - v_max), axis=1, keepdims=True))
    topo = -jnp.sum(lse * row_mask, keepdims=True)
    recon = jnp.sum(((A - gen_adj) ** 2) * (row_mask * col_mask), keepdims=True)
    struc = topo + recon                                             # (1, 1)

    # ---- single lane-dense loss output: [kld, struc, attr, 0, ...]
    lane = jax.lax.broadcasted_iota(jnp.int32, (1, 128), 1)
    loss_ref[...] = (kld * (lane == 0).astype(f32)
                     + struc * (lane == 1).astype(f32)
                     + attr_l * (lane == 2).astype(f32))


# ------------------------------------------------------------------
# Parameters: build the three packed slabs
# ------------------------------------------------------------------
def init_params(key, n_nodes=N_NODES):
    def dense(k, fan_in, fan_out):
        kw, kb = jax.random.split(k)
        w = jax.random.normal(kw, (fan_in, fan_out), jnp.float32) * 0.1
        b = jax.random.normal(kb, (1, fan_out), jnp.float32) * 0.01
        return np.asarray(w), np.asarray(b)

    keys = jax.random.split(key, 17)
    gin_w1, gin_b1 = dense(keys[0], X_DIM, ENC_HID)
    gin_w2, gin_b2 = dense(keys[1], ENC_HID, H_DIM)

    post_w1, post_b1 = dense(keys[2], 2 * H_DIM, POST_HID)      # rows: [phi_x | h]
    post_wm, post_bm = dense(keys[3], POST_HID, Z_DIM)
    post_ws, post_bs = dense(keys[4], POST_HID, Z_DIM)

    prior_w1, prior_b1 = dense(keys[5], H_DIM, PRIOR_HID)
    prior_wm, prior_bm = dense(keys[6], PRIOR_HID, Z_DIM)
    prior_ws, prior_bs = dense(keys[7], PRIOR_HID, Z_DIM)

    phiz_w, phiz_b = dense(keys[8], Z_DIM, H_DIM)

    topo_w1, topo_b1 = dense(keys[9], 2 * H_DIM, BERN_HID)      # rows: [phi_z | h]
    topo_wt, topo_bt = dense(keys[10], BERN_HID, KN)
    topo_wa, topo_ba = dense(keys[11], BERN_HID, KN)

    attr_w1, attr_b1 = dense(keys[12], 2 * H_DIM, ATTR_HID)     # rows: [phi_z | h]
    attr_wm, attr_bm = dense(keys[13], ATTR_HID, X_DIM)
    attr_ws, attr_bs = dense(keys[14], ATTR_HID, X_DIM)

    gru_wih, gru_bih = dense(keys[15], 2 * H_DIM, 3 * H_DIM)    # rows: [phi_x | phi_z]
    gru_whh, gru_bhh = dense(keys[16], H_DIM, 3 * H_DIM)

    # ---------------- w32 slab (fan-in 32) ----------------
    w32 = np.zeros((H_DIM, W32_LANES), np.float32)
    w32[:, OFF_GIN2:OFF_GIN2 + H_DIM] = gin_w2
    # merged h-head
    w32[:, OFF_HH + 0:OFF_HH + 32] = post_w1[H_DIM:]
    w32[:, OFF_HH + 32:OFF_HH + 64] = prior_w1
    w32[:, OFF_HH + 64:OFF_HH + 96] = topo_w1[H_DIM:]
    w32[:, OFF_HH + 96:OFF_HH + 128] = attr_w1[H_DIM:]
    w32[:, OFF_HH + 128:OFF_HH + 224] = gru_whh
    # merged phi_x-head
    w32[:, OFF_PXH + 0:OFF_PXH + 32] = post_w1[:H_DIM]
    w32[:, OFF_PXH + 32:OFF_PXH + 128] = gru_wih[:H_DIM]
    # merged phi_z-head
    w32[:, OFF_PZH + 0:OFF_PZH + 32] = topo_w1[:H_DIM]
    w32[:, OFF_PZH + 32:OFF_PZH + 64] = attr_w1[:H_DIM]
    w32[:, OFF_PZH + 64:OFF_PZH + 160] = gru_wih[H_DIM:]
    # merged mean|std / theta|alpha heads
    w32[:, OFF_POSTMS:OFF_POSTMS + Z_DIM] = post_wm
    w32[:, OFF_POSTMS + Z_DIM:OFF_POSTMS + 2 * Z_DIM] = post_ws
    w32[:, OFF_PRIORMS:OFF_PRIORMS + Z_DIM] = prior_wm
    w32[:, OFF_PRIORMS + Z_DIM:OFF_PRIORMS + 2 * Z_DIM] = prior_ws
    w32[:, OFF_TOPOTA:OFF_TOPOTA + KN] = topo_wt
    w32[:, OFF_TOPOTA + KN:OFF_TOPOTA + 2 * KN] = topo_wa
    w32[:, OFF_ATTRMS:OFF_ATTRMS + X_DIM] = attr_wm
    w32[:, OFF_ATTRMS + X_DIM:OFF_ATTRMS + 2 * X_DIM] = attr_ws

    # ---------------- bias slab ----------------
    bias = np.zeros((1, B_LANES), np.float32)
    bias[:, BOFF_GIN1:BOFF_GIN1 + ENC_HID] = gin_b1
    bias[:, BOFF_GIN2:BOFF_GIN2 + H_DIM] = gin_b2
    bias[:, BOFF_HH + 0:BOFF_HH + 32] = post_b1
    bias[:, BOFF_HH + 32:BOFF_HH + 64] = prior_b1
    bias[:, BOFF_HH + 64:BOFF_HH + 96] = topo_b1
    # attr slot [96:128) stays zero: attr_b1 is added AFTER the gen_adj matmul
    bias[:, BOFF_HH + 128:BOFF_HH + 224] = gru_bhh
    bias[:, BOFF_PXH + 32:BOFF_PXH + 128] = gru_bih     # post slot stays zero
    bias[:, BOFF_POSTMS:BOFF_POSTMS + Z_DIM] = post_bm
    bias[:, BOFF_POSTMS + Z_DIM:BOFF_POSTMS + 2 * Z_DIM] = post_bs
    bias[:, BOFF_PRIORMS:BOFF_PRIORMS + Z_DIM] = prior_bm
    bias[:, BOFF_PRIORMS + Z_DIM:BOFF_PRIORMS + 2 * Z_DIM] = prior_bs
    bias[:, BOFF_PHIZ:BOFF_PHIZ + H_DIM] = phiz_b
    bias[:, BOFF_TOPOTA:BOFF_TOPOTA + KN] = topo_bt
    bias[:, BOFF_TOPOTA + KN:BOFF_TOPOTA + 2 * KN] = topo_ba
    bias[:, BOFF_ATTRMS:BOFF_ATTRMS + X_DIM] = attr_bm
    bias[:, BOFF_ATTRMS + X_DIM:BOFF_ATTRMS + 2 * X_DIM] = attr_bs
    bias[:, BOFF_ATTRB1:BOFF_ATTRB1 + ATTR_HID] = attr_b1

    # ---------------- misc slab ----------------
    misc = np.zeros((MISC_ROWS, MISC_LANES), np.float32)
    misc[0:X_DIM, MOFF_GIN1:MOFF_GIN1 + ENC_HID] = gin_w1
    misc[0:Z_DIM, MOFF_PHIZ:MOFF_PHIZ + H_DIM] = phiz_w
    # mixture-selection constants (turn per-k reductions/broadcasts into matmuls)
    blk = np.zeros((KN, N_MIX), np.float32)
    for k in range(N_MIX):
        blk[k * MAX_N:(k + 1) * MAX_N, k] = 1.0
    blk_m = blk.copy()                                   # column mask j < n_nodes baked in
    for k in range(N_MIX):
        blk_m[k * MAX_N + n_nodes:(k + 1) * MAX_N, k] = 0.0
    sel = np.tile(np.eye(MAX_N, dtype=np.float32), (N_MIX, 1))      # (K*N, N)
    misc[:, MOFF_BLK:MOFF_BLK + N_MIX] = blk
    misc[:, MOFF_BLKM:MOFF_BLKM + N_MIX] = blk_m
    misc[:, MOFF_SEL:MOFF_SEL + MAX_N] = sel
    misc[0:N_MIX, MOFF_BLKT:MOFF_BLKT + KN] = blk.T
    misc[0:MAX_N, MOFF_SELT:MOFF_SELT + KN] = sel.T

    return {'w32': jnp.asarray(w32), 'bias': jnp.asarray(bias), 'misc': jnp.asarray(misc)}


# ------------------------------------------------------------------
# VRDAG.forward — one fused pallas_call (8 inputs, 2 outputs)
# ------------------------------------------------------------------
def vrdag_forward(params, A_t, X_t, h, t_vec, key):
    noise = jax.random.normal(key, (MAX_N, Z_DIM), jnp.float32)
    kernel = functools.partial(_vrdag_fused_kernel, nn=N_NODES, pos_w=POS_W, eps=EPS)

    h_new, losses = pl.pallas_call(
        kernel,
        out_shape=(
            jax.ShapeDtypeStruct((MAX_N, H_DIM), jnp.float32),   # h_new (aliases h)
            jax.ShapeDtypeStruct((1, 128), jnp.float32),         # [kld, struc, attr, ...]
        ),
        in_specs=[pl.BlockSpec(memory_space=VMEM)] * 8,
        out_specs=(pl.BlockSpec(memory_space=VMEM),
                   pl.BlockSpec(memory_space=VMEM)),
        input_output_aliases={2: 0},                             # h -> h_new in place
    )(A_t, X_t, h, t_vec, noise, params['w32'], params['bias'], params['misc'])

    return h_new, losses[0, 0], losses[0, 1], losses[0, 2]


# ------------------------------------------------------------------
if __name__ == "__main__":
    key = jax.random.PRNGKey(0)
    k_param, k_a, k_x, k_h, k_t, k_z = jax.random.split(key, 6)

    params = init_params(k_param)

    A_t = (jax.random.uniform(k_a, (MAX_N, MAX_N)) < 0.3).astype(jnp.float32)
    A_t = A_t * (1.0 - jnp.eye(MAX_N, dtype=jnp.float32))    # no self-loops
    X_t = jax.random.normal(k_x, (MAX_N, X_DIM), jnp.float32)
    h0 = jax.random.normal(k_h, (MAX_N, H_DIM), jnp.float32) * 0.1
    t_vec = jax.random.normal(k_t, (1, H_DIM), jnp.float32) * 0.1

    fwd = jax.jit(vrdag_forward)
    h_new, kld, struc, attr = fwd(params, A_t, X_t, h0, t_vec, k_z)
    jax.block_until_ready((h_new, kld, struc, attr))

    assert h_new.shape == (MAX_N, H_DIM)
    assert bool(jnp.isfinite(kld)) and bool(jnp.isfinite(struc)) and bool(jnp.isfinite(attr))
    print("KERNEL_OK")
</pallas_src>

<mosaic_0001>
module attributes {stable_mosaic.version = 11 : i64} {
  func.func @_vrdag_fused_kernel(%arg0: memref<16x16xf32, #tpu.memory_space<vmem>>, %arg1: memref<16x4xf32, #tpu.memory_space<vmem>>, %arg2: memref<16x32xf32, #tpu.memory_space<vmem>>, %arg3: memref<1x32xf32, #tpu.memory_space<vmem>>, %arg4: memref<16x16xf32, #tpu.memory_space<vmem>>, %arg5: memref<32x1280xf32, #tpu.memory_space<vmem>>, %arg6: memref<1x768xf32, #tpu.memory_space<vmem>>, %arg7: memref<64x256xf32, #tpu.memory_space<vmem>>, %arg8: memref<16x32xf32, #tpu.memory_space<vmem>>, %arg9: memref<1x128xf32, #tpu.memory_space<vmem>>) attributes {dimension_semantics = [], scalar_prefetch = 0 : i64, scratch_operands = 0 : i64, tpu.core_type = #tpu.core_type<tc>} {
    %c0 = arith.constant 0 : index
    %c0_0 = arith.constant 0 : index
    %0 = vector.load %arg0[%c0, %c0_0] : memref<16x16xf32, #tpu.memory_space<vmem>>, vector<16x16xf32>
    %c0_1 = arith.constant 0 : index
    %c0_2 = arith.constant 0 : index
    %1 = vector.load %arg1[%c0_1, %c0_2] : memref<16x4xf32, #tpu.memory_space<vmem>>, vector<16x4xf32>
    %c0_3 = arith.constant 0 : index
    %c0_4 = arith.constant 0 : index
    %2 = vector.load %arg2[%c0_3, %c0_4] : memref<16x32xf32, #tpu.memory_space<vmem>>, vector<16x32xf32>
    %c0_5 = arith.constant 0 : index
    %c0_6 = arith.constant 0 : index
    %3 = vector.load %arg7[%c0_5, %c0_6] : memref<64x256xf32, #tpu.memory_space<vmem>>, vector<4x32xf32>
    %c0_7 = arith.constant 0 : index
    %c0_8 = arith.constant 0 : index
    %4 = vector.load %arg6[%c0_7, %c0_8] : memref<1x768xf32, #tpu.memory_space<vmem>>, vector<1x32xf32>
    %cst = arith.constant dense<0.000000e+00> : vector<16x4xf32>
    %5 = tpu.matmul %0, %1, %cst {dimension_numbers = #tpu.dot_dimension_numbers<[1], [0], [0], [1], [0, 0, 1, 1], [], []>} : vector<16x16xf32>, vector<16x4xf32>, vector<16x4xf32> -> vector<16x4xf32>
    %6 = arith.addf %1, %5 : vector<16x4xf32>
    %cst_9 = arith.constant dense<0.000000e+00> : vector<16x32xf32>
    %7 = tpu.matmul %6, %3, %cst_9 {dimension_numbers = #tpu.dot_dimension_numbers<[1], [0], [0], [1], [0, 0, 1, 1], [], []>} : vector<16x4xf32>, vector<4x32xf32>, vector<16x32xf32> -> vector<16x32xf32>
    %8 = vector.broadcast %4 : vector<1x32xf32> to vector<16x32xf32>
    %9 = arith.addf %7, %8 : vector<16x32xf32>
    %cst_10 = arith.constant 0.000000e+00 : f32
    %10 = vector.broadcast %cst_10 : f32 to vector<16x32xf32>
    %11 = arith.maximumf %9, %10 : vector<16x32xf32>
    %c0_11 = arith.constant 0 : index
    %c0_12 = arith.constant 0 : index
    %12 = vector.load %arg5[%c0_11, %c0_12] : memref<32x1280xf32, #tpu.memory_space<vmem>>, vector<32x32xf32>
    %c0_13 = arith.constant 0 : index
    %c32 = arith.constant 32 : index
    %13 = vector.load %arg6[%c0_13, %c32] : memref<1x768xf32, #tpu.memory_space<vmem>>, vector<1x32xf32>
    %cst_14 = arith.constant dense<0.000000e+00> : vector<16x32xf32>
    %14 = tpu.matmul %0, %11, %cst_14 {dimension_numbers = #tpu.dot_dimension_numbers<[1], [0], [0], [1], [0, 0, 1, 1], [], []>} : vector<16x16xf32>, vector<16x32xf32>, vector<16x32xf32> -> vector<16x32xf32>
    %15 = arith.addf %11, %14 : vector<16x32xf32>
    %cst_15 = arith.constant dense<0.000000e+00> : vector<16x32xf32>
    %16 = tpu.matmul %15, %12, %cst_15 {dimension_numbers = #tpu.dot_dimension_numbers<[1], [0], [0], [1], [0, 0, 1, 1], [], []>} : vector<16x32xf32>, vector<32x32xf32>, vector<16x32xf32> -> vector<16x32xf32>
    %17 = vector.broadcast %13 : vector<1x32xf32> to vector<16x32xf32>
    %18 = arith.addf %16, %17 : vector<16x32xf32>
    %c0_16 = arith.constant 0 : index
    %c0_17 = arith.constant 0 : index
    %19 = vector.load %arg3[%c0_16, %c0_17] : memref<1x32xf32, #tpu.memory_space<vmem>>, vector<1x32xf32>
    %20 = vector.broadcast %19 : vector<1x32xf32> to vector<16x32xf32>
    %21 = arith.addf %18, %20 : vector<16x32xf32>
    %c0_18 = arith.constant 0 : index
    %c128 = arith.constant 128 : index
    %22 = vector.load %arg5[%c0_18, %c128] : memref<32x1280xf32, #tpu.memory_space<vmem>>, vector<32x224xf32>
    %cst_19 = arith.constant dense<0.000000e+00> : vector<16x224xf32>
    %23 = tpu.matmul %2, %22, %cst_19 {dimension_numbers = #tpu.dot_dimension_numbers<[1], [0], [0], [1], [0, 0, 1, 1], [], []>} : vector<16x32xf32>, vector<32x224xf32>, vector<16x224xf32> -> vector<16x224xf32>
    %c0_20 = arith.constant 0 : index
    %c64 = arith.constant 64 : index
    %24 = vector.load %arg6[%c0_20, %c64] : memref<1x768xf32, #tpu.memory_space<vmem>>, vector<1x224xf32>
    %25 = vector.broadcast %24 : vector<1x224xf32> to vector<16x224xf32>
    %26 = arith.addf %23, %25 : vector<16x224xf32>
    %c0_21 = arith.constant 0 : index
    %c384 = arith.constant 384 : index
    %27 = vector.load %arg5[%c0_21, %c384] : memref<32x1280xf32, #tpu.memory_space<vmem>>, vector<32x128xf32>
    %cst_22 = arith.constant dense<0.000000e+00> : vector<16x128xf32>
    %28 = tpu.matmul %21, %27, %cst_22 {dimension_numbers = #tpu.dot_dimension_numbers<[1], [0], [0], [1], [0, 0, 1, 1], [], []>} : vector<16x32xf32>, vector<32x128xf32>, vector<16x128xf32> -> vector<16x128xf32>
    %c0_23 = arith.constant 0 : index
    %c288 = arith.constant 288 : index
    %29 = vector.load %arg6[%c0_23, %c288] : memref<1x768xf32, #tpu.memory_space<vmem>>, vector<1x128xf32>
    %30 = vector.broadcast %29 : vector<1x128xf32> to vector<16x128xf32>
    %31 = arith.addf %28, %30 : vector<16x128xf32>
    %32 = vector.extract_strided_slice %31 {offsets = [0, 0], sizes = [16, 32], strides = [1, 1]} : vector<16x128xf32> to vector<16x32xf32>
    %33 = vector.extract_strided_slice %26 {offsets = [0, 0], sizes = [16, 32], strides = [1, 1]} : vector<16x224xf32> to vector<16x32xf32>
    %34 = arith.addf %32, %33 : vector<16x32xf32>
    %cst_24 = arith.constant 0.000000e+00 : f32
    %35 = vector.broadcast %cst_24 : f32 to vector<16x32xf32>
    %36 = arith.maximumf %34, %35 : vector<16x32xf32>
    %c0_25 = arith.constant 0 : index
    %c768 = arith.constant 768 : index
    %37 = vector.load %arg5[%c0_25, %c768] : memref<32x1280xf32, #tpu.memory_space<vmem>>, vector<32x32xf32>
    %cst_26 = arith.constant dense<0.000000e+00> : vector<16x32xf32>
    %38 = tpu.matmul %36, %37, %cst_26 {dimension_numbers = #tpu.dot_dimension_numbers<[1], [0], [0], [1], [0, 0, 1, 1], [], []>} : vector<16x32xf32>, vector<32x32xf32>, vector<16x32xf32> -> vector<16x32xf32>
    %c0_27 = arith.constant 0 : index
    %c416 = arith.constant 416 : index
    %39 = vector.load %arg6[%c0_27, %c416] : memref<1x768xf32, #tpu.memory_space<vmem>>, vector<1x32xf32>
    %40 = vector.broadcast %39 : vector<1x32xf32> to vector<16x32xf32>
    %41 = arith.addf %38, %40 : vector<16x32xf32>
    %42 = vector.extract_strided_slice %41 {offsets = [0, 0], sizes = [16, 16], strides = [1, 1]} : vector<16x32xf32> to vector<16x16xf32>
    %43 = vector.extract_strided_slice %41 {offsets = [0, 16], sizes = [16, 16], strides = [1, 1]} : vector<16x32xf32> to vector<16x16xf32>
    %cst_28 = arith.constant 0.000000e+00 : f32
    %44 = vector.broadcast %cst_28 : f32 to vector<16x16xf32>
    %45 = arith.maximumf %43, %44 : vector<16x16xf32>
    %46 = vector.broadcast %cst_28 : f32 to vector<16x16xf32>
    %47 = arith.subf %43, %46 : vector<16x16xf32>
    %48 = arith.cmpf one, %47, %47 : vector<16x16xf32>
    %49 = vector.broadcast %cst_28 : f32 to vector<16x16xf32>
    %50 = arith.addf %43, %49 : vector<16x16xf32>
    %51 = math.absf %47 : vector<16x16xf32>
    %cst_29 = arith.constant 0.000000e+00 : f32
    %52 = vector.broadcast %cst_29 : f32 to vector<16x16xf32>
    %53 = arith.subf %52, %51 : vector<16x16xf32>
    %54 = math.exp %53 : vector<16x16xf32>
    %55 = math.log1p %54 : vector<16x16xf32>
    %56 = arith.addf %45, %55 : vector<16x16xf32>
    %57 = arith.select %48, %50, %56 : vector<16x16xi1>, vector<16x16xf32>
    %58 = vector.extract_strided_slice %26 {offsets = [0, 32], sizes = [16, 32], strides = [1, 1]} : vector<16x224xf32> to vector<16x32xf32>
    %cst_30 = arith.constant 0.000000e+00 : f32
    %59 = vector.broadcast %cst_30 : f32 to vector<16x32xf32>
    %60 = arith.maximumf %58, %59 : vector<16x32xf32>
    %c0_31 = arith.constant 0 : index
    %c896 = arith.constant 896 : index
    %61 = vector.load %arg5[%c0_31, %c896] : memref<32x1280xf32, #tpu.memory_space<vmem>>, vector<32x32xf32>
    %cst_32 = arith.constant dense<0.000000e+00> : vector<16x32xf32>
    %62 = tpu.matmul %60, %61, %cst_32 {dimension_numbers = #tpu.dot_dimension_numbers<[1], [0], [0], [1], [0, 0, 1, 1], [], []>} : vector<16x32xf32>, vector<32x32xf32>, vector<16x32xf32> -> vector<16x32xf32>
    %c0_33 = arith.constant 0 : index
    %c448 = arith.constant 448 : index
    %63 = vector.load %arg6[%c0_33, %c448] : memref<1x768xf32, #tpu.memory_space<vmem>>, vector<1x32xf32>
    %64 = vector.broadcast %63 : vector<1x32xf32> to vector<16x32xf32>
    %65 = arith.addf %62, %64 : vector<16x32xf32>
    %66 = vector.extract_strided_slice %65 {offsets = [0, 0], sizes = [16, 16], strides = [1, 1]} : vector<16x32xf32> to vector<16x16xf32>
    %67 = vector.extract_strided_slice %65 {offsets = [0, 16], sizes = [16, 16], strides = [1, 1]} : vector<16x32xf32> to vector<16x16xf32>
    %cst_34 = arith.constant 0.000000e+00 : f32
    %68 = vector.broadcast %cst_34 : f32 to vector<16x16xf32>
    %69 = arith.maximumf %67, %68 : vector<16x16xf32>
    %70 = vector.broadcast %cst_34 : f32 to vector<16x16xf32>
    %71 = arith.subf %67, %70 : vector<16x16xf32>
    %72 = arith.cmpf one, %71, %71 : vector<16x16xf32>
    %73 = vector.broadcast %cst_34 : f32 to vector<16x16xf32>
    %74 = arith.addf %67, %73 : vector<16x16xf32>
    %75 = math.absf %71 : vector<16x16xf32>
    %cst_35 = arith.constant 0.000000e+00 : f32
    %76 = vector.broadcast %cst_35 : f32 to vector<16x16xf32>
    %77 = arith.subf %76, %75 : vector<16x16xf32>
    %78 = math.exp %77 : vector<16x16xf32>
    %79 = math.log1p %78 : vector<16x16xf32>
    %80 = arith.addf %69, %79 : vector<16x16xf32>
    %81 = arith.select %72, %74, %80 : vector<16x16xi1>, vector<16x16xf32>
    %c0_36 = arith.constant 0 : index
    %c0_37 = arith.constant 0 : index
    %82 = vector.load %arg4[%c0_36, %c0_37] : memref<16x16xf32, #tpu.memory_space<vmem>>, vector<16x16xf32>
    %83 = arith.mulf %82, %57 : vector<16x16xf32>
    %84 = arith.addf %83, %42 : vector<16x16xf32>
    %c0_38 = arith.constant 0 : index
    %c32_39 = arith.constant 32 : index
    %85 = vector.load %arg7[%c0_38, %c32_39] : memref<64x256xf32, #tpu.memory_space<vmem>>, vector<16x32xf32>
    %c0_40 = arith.constant 0 : index
    %c480 = arith.constant 480 : index
    %86 = vector.load %arg6[%c0_40, %c480] : memref<1x768xf32, #tpu.memory_space<vmem>>, vector<1x32xf32>
    %cst_41 = arith.constant dense<0.000000e+00> : vector<16x32xf32>
    %87 = tpu.matmul %84, %85, %cst_41 {dimension_numbers = #tpu.dot_dimension_numbers<[1], [0], [0], [1], [0, 0, 1, 1], [], []>} : vector<16x16xf32>, vector<16x32xf32>, vector<16x32xf32> -> vector<16x32xf32>
    %88 = vector.broadcast %86 : vector<1x32xf32> to vector<16x32xf32>
    %89 = arith.addf %87, %88 : vector<16x32xf32>
    %cst_42 = arith.constant 0.000000e+00 : f32
    %90 = vector.broadcast %cst_42 : f32 to vector<16x32xf32>
    %91 = arith.maximumf %89, %90 : vector<16x32xf32>
    %c0_43 = arith.constant 0 : index
    %c512 = arith.constant 512 : index
    %92 = vector.load %arg5[%c0_43, %c512] : memref<32x1280xf32, #tpu.memory_space<vmem>>, vector<32x160xf32>
    %cst_44 = arith.constant dense<0.000000e+00> : vector<16x160xf32>
    %93 = tpu.matmul %91, %92, %cst_44 {dimension_numbers = #tpu.dot_dimension_numbers<[1], [0], [0], [1], [0, 0, 1, 1], [], []>} : vector<16x32xf32>, vector<32x160xf32>, vector<16x160xf32> -> vector<16x160xf32>
    %94 = vector.extract_strided_slice %93 {offsets = [0, 0], sizes = [16, 32], strides = [1, 1]} : vector<16x160xf32> to vector<16x32xf32>
    %95 = vector.extract_strided_slice %26 {offsets = [0, 64], sizes = [16, 32], strides = [1, 1]} : vector<16x224xf32> to vector<16x32xf32>
    %96 = arith.addf %94, %95 : vector<16x32xf32>
    %cst_45 = arith.constant 0.000000e+00 : f32
    %97 = vector.broadcast %cst_45 : f32 to vector<16x32xf32>
    %98 = arith.maximumf %96, %97 : vector<16x32xf32>
    %c0_46 = arith.constant 0 : index
    %c1024 = arith.constant 1024 : index
    %99 = vector.load %arg5[%c0_46, %c1024] : memref<32x1280xf32, #tpu.memory_space<vmem>>, vector<32x128xf32>
    %cst_47 = arith.constant dense<0.000000e+00> : vector<16x128xf32>
    %100 = tpu.matmul %98, %99, %cst_47 {dimension_numbers = #tpu.dot_dimension_numbers<[1], [0], [0], [1], [0, 0, 1, 1], [], []>} : vector<16x32xf32>, vector<32x128xf32>, vector<16x128xf32> -> vector<16x128xf32>
    %c0_48 = arith.constant 0 : index
    %c512_49 = arith.constant 512 : index
    %101 = vector.load %arg6[%c0_48, %c512_49] : memref<1x768xf32, #tpu.memory_space<vmem>>, vector<1x128xf32>
    %102 = vector.broadcast %101 : vector<1x128xf32> to vector<16x128xf32>
    %103 = arith.addf %100, %102 : vector<16x128xf32>
    %104 = vector.extract_strided_slice %103 {offsets = [0, 0], sizes = [16, 64], strides = [1, 1]} : vector<16x128xf32> to vector<16x64xf32>
    %105 = vector.extract_strided_slice %103 {offsets = [0, 64], sizes = [16, 64], strides = [1, 1]} : vector<16x128xf32> to vector<16x64xf32>
    %c0_50 = arith.constant 0 : index
    %c64_51 = arith.constant 64 : index
    %106 = vector.load %arg7[%c0_50, %c64_51] : memref<64x256xf32, #tpu.memory_space<vmem>>, vector<64x4xf32>
    %c0_52 = arith.constant 0 : index
    %c68 = arith.constant 68 : index
    %107 = vector.load %arg7[%c0_52, %c68] : memref<64x256xf32, #tpu.memory_space<vmem>>, vector<64x4xf32>
    %c0_53 = arith.constant 0 : index
    %c72 = arith.constant 72 : index
    %108 = vector.load %arg7[%c0_53, %c72] : memref<64x256xf32, #tpu.memory_space<vmem>>, vector<64x16xf32>
    %c0_54 = arith.constant 0 : index
    %c128_55 = arith.constant 128 : index
    %109 = vector.load %arg7[%c0_54, %c128_55] : memref<64x256xf32, #tpu.memory_space<vmem>>, vector<4x64xf32>
    %c0_56 = arith.constant 0 : index
    %c192 = arith.constant 192 : index
    %110 = vector.load %arg7[%c0_56, %c192] : memref<64x256xf32, #tpu.memory_space<vmem>>, vector<16x64xf32>
    %cst_57 = arith.constant dense<0.000000e+00> : vector<16x4xf32>
    %111 = tpu.matmul %105, %106, %cst_57 {dimension_numbers = #tpu.dot_dimension_numbers<[1], [0], [0], [1], [0, 0, 1, 1], [], []>} : vector<16x64xf32>, vector<64x4xf32>, vector<16x4xf32> -> vector<16x4xf32>
    %cst_58 = arith.constant dense<0xFF800000> : vector<16xf32>
    %112 = vector.multi_reduction <maximumf>, %111, %cst_58 [1] : vector<16x4xf32> to vector<16xf32>
    %113 = vector.shape_cast %112 : vector<16xf32> to vector<16x1xf32>
    %114 = vector.broadcast %113 : vector<16x1xf32> to vector<16x4xf32>
    %115 = arith.subf %111, %114 : vector<16x4xf32>
    %116 = math.exp %115 : vector<16x4xf32>
    %cst_59 = arith.constant dense<0.000000e+00> : vector<16xf32>
    %117 = vector.multi_reduction <add>, %116, %cst_59 [1] : vector<16x4xf32> to vector<16xf32>
    %118 = vector.shape_cast %117 : vector<16xf32> to vector<16x1xf32>
    %119 = tpu.reciprocal %118 {approx = true} : vector<16x1xf32> -> vector<16x1xf32>
    %120 = vector.broadcast %119 : vector<16x1xf32> to vector<16x4xf32>
    %121 = arith.mulf %116, %120 : vector<16x4xf32>
    %122 = vector.broadcast %113 : vector<16x1xf32> to vector<16x4xf32>
    %123 = arith.subf %111, %122 : vector<16x4xf32>
    %124 = math.log %118 : vector<16x1xf32>
    %125 = vector.broadcast %124 : vector<16x1xf32> to vector<16x4xf32>
    %126 = arith.subf %123, %125 : vector<16x4xf32>
    %cst_60 = arith.constant dense<0.000000e+00> : vector<16x64xf32>
    %127 = tpu.matmul %121, %109, %cst_60 {dimension_numbers = #tpu.dot_dimension_numbers<[1], [0], [0], [1], [0, 0, 1, 1], [], []>} : vector<16x4xf32>, vector<4x64xf32>, vector<16x64xf32> -> vector<16x64xf32>
    %128 = arith.negf %104 : vector<16x64xf32>
    %129 = math.exp %128 : vector<16x64xf32>
    %cst_61 = arith.constant 1.000000e+00 : f32
    %130 = vector.broadcast %cst_61 : f32 to vector<16x64xf32>
    %131 = arith.addf %130, %129 : vector<16x64xf32>
    %132 = arith.divf %130, %131 : vector<16x64xf32>
    %133 = arith.mulf %127, %132 : vector<16x64xf32>
    %cst_62 = arith.constant dense<0.000000e+00> : vector<16x16xf32>
    %134 = tpu.matmul %133, %108, %cst_62 {dimension_numbers = #tpu.dot_dimension_numbers<[1], [0], [0], [1], [0, 0, 1, 1], [], []>} : vector<16x64xf32>, vector<64x16xf32>, vector<16x16xf32> -> vector<16x16xf32>
    %c0_63 = arith.constant 0 : index
    %c648 = arith.constant 648 : index
    %135 = vector.load %arg6[%c0_63, %c648] : memref<1x768xf32, #tpu.memory_space<vmem>>, vector<1x32xf32>
    %136 = vector.extract_strided_slice %93 {offsets = [0, 32], sizes = [16, 32], strides = [1, 1]} : vector<16x160xf32> to vector<16x32xf32>
    %137 = vector.extract_strided_slice %26 {offsets = [0, 96], sizes = [16, 32], strides = [1, 1]} : vector<16x224xf32> to vector<16x32xf32>
    %138 = arith.addf %136, %137 : vector<16x32xf32>
    %cst_64 = arith.constant dense<0.000000e+00> : vector<16x32xf32>
    %139 = tpu.matmul %134, %138, %cst_64 {dimension_numbers = #tpu.dot_dimension_numbers<[1], [0], [0], [1], [0, 0, 1, 1], [], []>} : vector<16x16xf32>, vector<16x32xf32>, vector<16x32xf32> -> vector<16x32xf32>
    %140 = vector.broadcast %135 : vector<1x32xf32> to vector<16x32xf32>
    %141 = arith.addf %139, %140 : vector<16x32xf32>
    %cst_65 = arith.constant 0.000000e+00 : f32
    %142 = vector.broadcast %cst_65 : f32 to vector<16x32xf32>
    %143 = arith.maximumf %141, %142 : vector<16x32xf32>
    %c0_66 = arith.constant 0 : index
    %c1152 = arith.constant 1152 : index
    %144 = vector.load %arg5[%c0_66, %c1152] : memref<32x1280xf32, #tpu.memory_space<vmem>>, vector<32x8xf32>
    %cst_67 = arith.constant dense<0.000000e+00> : vector<16x8xf32>
    %145 = tpu.matmul %143, %144, %cst_67 {dimension_numbers = #tpu.dot_dimension_numbers<[1], [0], [0], [1], [0, 0, 1, 1], [], []>} : vector<16x32xf32>, vector<32x8xf32>, vector<16x8xf32> -> vector<16x8xf32>
    %c0_68 = arith.constant 0 : index
    %c640 = arith.constant 640 : index
    %146 = vector.load %arg6[%c0_68, %c640] : memref<1x768xf32, #tpu.memory_space<vmem>>, vector<1x8xf32>
    %147 = vector.broadcast %146 : vector<1x8xf32> to vector<16x8xf32>
    %148 = arith.addf %145, %147 : vector<16x8xf32>
    %149 = vector.extract_strided_slice %148 {offsets = [0, 0], sizes = [16, 4], strides = [1, 1]} : vector<16x8xf32> to vector<16x4xf32>
    %150 = vector.extract_strided_slice %148 {offsets = [0, 4], sizes = [16, 4], strides = [1, 1]} : vector<16x8xf32> to vector<16x4xf32>
    %cst_69 = arith.constant 0.000000e+00 : f32
    %151 = vector.broadcast %cst_69 : f32 to vector<16x4xf32>
    %152 = arith.maximumf %150, %151 : vector<16x4xf32>
    %153 = vector.broadcast %cst_69 : f32 to vector<16x4xf32>
    %154 = arith.subf %150, %153 : vector<16x4xf32>
    %155 = arith.cmpf one, %154, %154 : vector<16x4xf32>
    %156 = vector.broadcast %cst_69 : f32 to vector<16x4xf32>
    %157 = arith.addf %150, %156 : vector<16x4xf32>
    %158 = math.absf %154 : vector<16x4xf32>
    %cst_70 = arith.constant 0.000000e+00 : f32
    %159 = vector.broadcast %cst_70 : f32 to vector<16x4xf32>
    %160 = arith.subf %159, %158 : vector<16x4xf32>
    %161 = math.exp %160 : vector<16x4xf32>
    %162 = math.log1p %161 : vector<16x4xf32>
    %163 = arith.addf %152, %162 : vector<16x4xf32>
    %164 = arith.select %155, %157, %163 : vector<16x4xi1>, vector<16x4xf32>
    %165 = vector.extract_strided_slice %31 {offsets = [0, 32], sizes = [16, 96], strides = [1, 1]} : vector<16x128xf32> to vector<16x96xf32>
    %166 = vector.extract_strided_slice %93 {offsets = [0, 64], sizes = [16, 96], strides = [1, 1]} : vector<16x160xf32> to vector<16x96xf32>
    %167 = arith.addf %165, %166 : vector<16x96xf32>
    %168 = vector.extract_strided_slice %26 {offsets = [0, 128], sizes = [16, 96], strides = [1, 1]} : vector<16x224xf32> to vector<16x96xf32>
    %169 = vector.extract_strided_slice %167 {offsets = [0, 0], sizes = [16, 32], strides = [1, 1]} : vector<16x96xf32> to vector<16x32xf32>
    %170 = vector.extract_strided_slice %168 {offsets = [0, 0], sizes = [16, 32], strides = [1, 1]} : vector<16x96xf32> to vector<16x32xf32>
    %171 = arith.addf %169, %170 : vector<16x32xf32>
    %172 = arith.negf %171 : vector<16x32xf32>
    %173 = math.exp %172 : vector<16x32xf32>
    %cst_71 = arith.constant 1.000000e+00 : f32
    %174 = vector.broadcast %cst_71 : f32 to vector<16x32xf32>
    %175 = arith.addf %174, %173 : vector<16x32xf32>
    %176 = arith.divf %174, %175 : vector<16x32xf32>
    %177 = vector.extract_strided_slice %167 {offsets = [0, 32], sizes = [16, 32], strides = [1, 1]} : vector<16x96xf32> to vector<16x32xf32>
    %178 = vector.extract_strided_slice %168 {offsets = [0, 32], sizes = [16, 32], strides = [1, 1]} : vector<16x96xf32> to vector<16x32xf32>
    %179 = arith.addf %177, %178 : vector<16x32xf32>
    %180 = arith.negf %179 : vector<16x32xf32>
    %181 = math.exp %180 : vector<16x32xf32>
    %cst_72 = arith.constant 1.000000e+00 : f32
    %182 = vector.broadcast %cst_72 : f32 to vector<16x32xf32>
    %183 = arith.addf %182, %181 : vector<16x32xf32>
    %184 = arith.divf %182, %183 : vector<16x32xf32>
    %185 = vector.extract_strided_slice %167 {offsets = [0, 64], sizes = [16, 32], strides = [1, 1]} : vector<16x96xf32> to vector<16x32xf32>
    %186 = vector.extract_strided_slice %168 {offsets = [0, 64], sizes = [16, 32], strides = [1, 1]} : vector<16x96xf32> to vector<16x32xf32>
    %187 = arith.mulf %176, %186 : vector<16x32xf32>
    %188 = arith.addf %185, %187 : vector<16x32xf32>
    %189 = math.tanh %188 : vector<16x32xf32>
    %cst_73 = arith.constant 1.000000e+00 : f32
    %190 = vector.broadcast %cst_73 : f32 to vector<16x32xf32>
    %191 = arith.subf %190, %184 : vector<16x32xf32>
    %192 = arith.mulf %191, %189 : vector<16x32xf32>
    %193 = arith.mulf %184, %2 : vector<16x32xf32>
    %194 = arith.addf %192, %193 : vector<16x32xf32>
    %c0_74 = arith.constant 0 : index
    %c0_75 = arith.constant 0 : index
    %195 = vector.load %arg8[%c0_74, %c0_75] : memref<16x32xf32, #tpu.memory_space<vmem>>, vector<16x32xf32>
    tpu.vector_store %arg8[%c0_74, %c0_75], %194 {strides = array<i32>} : memref<16x32xf32, #tpu.memory_space<vmem>>, vector<16x32xf32>,
    %196 = tpu.iota {dimensions = array<i32: 0>} : vector<16x1xi32>
    %c12_i32 = arith.constant 12 : i32
    %197 = vector.broadcast %c12_i32 : i32 to vector<16x1xi32>
    %198 = arith.cmpi slt, %196, %197 : vector<16x1xi32>
    %199 = arith.extui %198 : vector<16x1xi1> to vector<16x1xi32>
    %200 = arith.sitofp %199 : vector<16x1xi32> to vector<16x1xf32>
    %201 = tpu.iota {dimensions = array<i32: 1>} : vector<1x16xi32>
    %c12_i32_76 = arith.constant 12 : i32
    %202 = vector.broadcast %c12_i32_76 : i32 to vector<1x16xi32>
    %203 = arith.cmpi slt, %201, %202 : vector<1x16xi32>
    %204 = arith.extui %203 : vector<1x16xi1> to vector<1x16xi32>
    %205 = arith.sitofp %204 : vector<1x16xi32> to vector<1x16xf32>
    %206 = math.log %81 : vector<16x16xf32>
    %207 = math.log %57 : vector<16x16xf32>
    %208 = arith.subf %206, %207 : vector<16x16xf32>
    %209 = arith.mulf %57, %57 : vector<16x16xf32>
    %210 = arith.subf %42, %66 : vector<16x16xf32>
    %211 = arith.mulf %210, %210 : vector<16x16xf32>
    %212 = arith.addf %209, %211 : vector<16x16xf32>
    %213 = arith.mulf %81, %81 : vector<16x16xf32>
    %214 = tpu.reciprocal %213 {approx = true} : vector<16x16xf32> -> vector<16x16xf32>
    %cst_77 = arith.constant 5.000000e-01 : f32
    %215 = vector.broadcast %cst_77 : f32 to vector<16x16xf32>
    %216 = arith.mulf %215, %214 : vector<16x16xf32>
    %217 = arith.mulf %212, %216 : vector<16x16xf32>
    %218 = arith.addf %208, %217 : vector<16x16xf32>
    %cst_78 = arith.constant 5.000000e-01 : f32
    %219 = vector.broadcast %cst_78 : f32 to vector<16x16xf32>
    %220 = arith.subf %218, %219 : vector<16x16xf32>
    %221 = vector.shape_cast %220 : vector<16x16xf32> to vector<1x16x16xf32>
    %cst_79 = arith.constant dense<0.000000e+00> : vector<1xf32>
    %222 = vector.multi_reduction <add>, %221, %cst_79 [1, 2] : vector<1x16x16xf32> to vector<1xf32>
    %223 = vector.shape_cast %222 : vector<1xf32> to vector<1x1x1xf32>
    %224 = vector.extract %223[0, 0, 0] : f32 from vector<1x1x1xf32>
    %225 = vector.broadcast %224 : f32 to vector<1x1xf32>
    %cst_80 = arith.constant 5.000000e-01 : f32
    %226 = vector.broadcast %cst_80 : f32 to vector<1x1xf32>
    %227 = arith.mulf %226, %225 : vector<1x1xf32>
    %cst_81 = arith.constant 9.99999997E-7 : f32
    %228 = vector.broadcast %cst_81 : f32 to vector<16x4xf32>
    %229 = arith.addf %164, %228 : vector<16x4xf32>
    %230 = math.log %229 : vector<16x4xf32>
    %cst_82 = arith.constant 0.918938517 : f32
    %231 = vector.broadcast %cst_82 : f32 to vector<16x4xf32>
    %232 = arith.addf %230, %231 : vector<16x4xf32>
    %233 = arith.subf %1, %149 : vector<16x4xf32>
    %234 = arith.mulf %233, %233 : vector<16x4xf32>
    %235 = arith.mulf %229, %229 : vector<16x4xf32>
    %236 = tpu.reciprocal %235 {approx = true} : vector<16x4xf32> -> vector<16x4xf32>
    %cst_83 = arith.constant 5.000000e-01 : f32
    %237 = vector.broadcast %cst_83 : f32 to vector<16x4xf32>
    %238 = arith.mulf %237, %236 : vector<16x4xf32>
    %239 = arith.mulf %234, %238 : vector<16x4xf32>
    %240 = arith.addf %232, %239 : vector<16x4xf32>
    %241 = vector.shape_cast %240 : vector<16x4xf32> to vector<1x16x4xf32>
    %cst_84 = arith.constant dense<0.000000e+00> : vector<1xf32>
    %242 = vector.multi_reduction <add>, %241, %cst_84 [1, 2] : vector<1x16x4xf32> to vector<1xf32>
    %243 = vector.shape_cast %242 : vector<1xf32> to vector<1x1x1xf32>
    %244 = vector.extract %243[0, 0, 0] : f32 from vector<1x1x1xf32>
    %245 = vector.broadcast %244 : f32 to vector<1x1xf32>
    %cst_85 = arith.constant dense<0.000000e+00> : vector<16x64xf32>
    %246 = tpu.matmul %0, %110, %cst_85 {dimension_numbers = #tpu.dot_dimension_numbers<[1], [0], [0], [1], [0, 0, 1, 1], [], []>} : vector<16x16xf32>, vector<16x64xf32>, vector<16x64xf32> -> vector<16x64xf32>
    %cst_86 = arith.constant 2.000000e+00 : f32
    %247 = vector.broadcast %cst_86 : f32 to vector<16x64xf32>
    %248 = arith.mulf %247, %246 : vector<16x64xf32>
    %cst_87 = arith.constant 0.000000e+00 : f32
    %249 = vector.broadcast %cst_87 : f32 to vector<16x64xf32>
    %250 = arith.subf %249, %104 : vector<16x64xf32>
    %cst_88 = arith.constant 0.000000e+00 : f32
    %251 = vector.broadcast %cst_88 : f32 to vector<16x64xf32>
    %252 = arith.maximumf %250, %251 : vector<16x64xf32>
    %253 = vector.broadcast %cst_88 : f32 to vector<16x64xf32>
    %254 = arith.subf %250, %253 : vector<16x64xf32>
    %255 = arith.cmpf one, %254, %254 : vector<16x64xf32>
    %256 = vector.broadcast %cst_88 : f32 to vector<16x64xf32>
    %257 = arith.addf %250, %256 : vector<16x64xf32>
    %258 = math.absf %254 : vector<16x64xf32>
    %cst_89 = arith.constant 0.000000e+00 : f32
    %259 = vector.broadcast %cst_89 : f32 to vector<16x64xf32>
    %260 = arith.subf %259, %258 : vector<16x64xf32>
    %261 = math.exp %260 : vector<16x64xf32>
    %262 = math.log1p %261 : vector<16x64xf32>
    %263 = arith.addf %252, %262 : vector<16x64xf32>
    %264 = arith.select %255, %257, %263 : vector<16x64xi1>, vector<16x64xf32>
    %265 = arith.mulf %248, %264 : vector<16x64xf32>
    %cst_90 = arith.constant 1.000000e+00 : f32
    %266 = vector.broadcast %cst_90 : f32 to vector<16x64xf32>
    %267 = arith.subf %266, %246 : vector<16x64xf32>
    %cst_91 = arith.constant 0.000000e+00 : f32
    %268 = vector.broadcast %cst_91 : f32 to vector<16x64xf32>
    %269 = arith.maximumf %104, %268 : vector<16x64xf32>
    %270 = vector.broadcast %cst_91 : f32 to vector<16x64xf32>
    %271 = arith.subf %104, %270 : vector<16x64xf32>
    %272 = arith.cmpf one, %271, %271 : vector<16x64xf32>
    %273 = vector.broadcast %cst_91 : f32 to vector<16x64xf32>
    %274 = arith.addf %104, %273 : vector<16x64xf32>
    %275 = math.absf %271 : vector<16x64xf32>
    %cst_92 = arith.constant 0.000000e+00 : f32
    %276 = vector.broadcast %cst_92 : f32 to vector<16x64xf32>
    %277 = arith.subf %276, %275 : vector<16x64xf32>
    %278 = math.exp %277 : vector<16x64xf32>
    %279 = math.log1p %278 : vector<16x64xf32>
    %280 = arith.addf %269, %279 : vector<16x64xf32>
    %281 = arith.select %272, %274, %280 : vector<16x64xi1>, vector<16x64xf32>
    %282 = arith.mulf %267, %281 : vector<16x64xf32>
    %283 = arith.addf %265, %282 : vector<16x64xf32>
    %cst_93 = arith.constant dense<0.000000e+00> : vector<16x4xf32>
    %284 = tpu.matmul %283, %107, %cst_93 {dimension_numbers = #tpu.dot_dimension_numbers<[1], [0], [0], [1], [0, 0, 1, 1], [], []>} : vector<16x64xf32>, vector<64x4xf32>, vector<16x4xf32> -> vector<16x4xf32>
    %285 = arith.subf %126, %284 : vector<16x4xf32>
    %cst_94 = arith.constant dense<0xFF800000> : vector<16xf32>
    %286 = vector.multi_reduction <maximumf>, %285, %cst_94 [1] : vector<16x4xf32> to vector<16xf32>
    %287 = vector.shape_cast %286 : vector<16xf32> to vector<16x1xf32>
    %288 = vector.broadcast %287 : vector<16x1xf32> to vector<16x4xf32>
    %289 = arith.subf %285, %288 : vector<16x4xf32>
    %290 = math.exp %289 : vector<16x4xf32>
    %cst_95 = arith.constant dense<0.000000e+00> : vector<16xf32>
    %291 = vector.multi_reduction <add>, %290, %cst_95 [1] : vector<16x4xf32> to vector<16xf32>
    %292 = vector.shape_cast %291 : vector<16xf32> to vector<16x1xf32>
    %293 = math.log %292 : vector<16x1xf32>
    %294 = arith.addf %287, %293 : vector<16x1xf32>
    %295 = arith.mulf %294, %200 : vector<16x1xf32>
    %296 = vector.shape_cast %295 : vector<16x1xf32> to vector<1x16x1xf32>
    %cst_96 = arith.constant dense<0.000000e+00> : vector<1xf32>
    %297 = vector.multi_reduction <add>, %296, %cst_96 [1, 2] : vector<1x16x1xf32> to vector<1xf32>
    %298 = vector.shape_cast %297 : vector<1xf32> to vector<1x1x1xf32>
    %299 = vector.extract %298[0, 0, 0] : f32 from vector<1x1x1xf32>
    %300 = vector.broadcast %299 : f32 to vector<1x1xf32>
    %cst_97 = arith.constant 0.000000e+00 : f32
    %301 = vector.broadcast %cst_97 : f32 to vector<1x1xf32>
    %302 = arith.subf %301, %300 : vector<1x1xf32>
    %303 = arith.subf %0, %134 : vector<16x16xf32>
    %304 = arith.mulf %303, %303 : vector<16x16xf32>
    %305 = vector.broadcast %200 : vector<16x1xf32> to vector<16x16xf32>
    %306 = vector.broadcast %205 : vector<1x16xf32> to vector<16x16xf32>
    %307 = arith.mulf %305, %306 : vector<16x16xf32>
    %308 = arith.mulf %304, %307 : vector<16x16xf32>
    %309 = vector.shape_cast %308 : vector<16x16xf32> to vector<1x16x16xf32>
    %cst_98 = arith.constant dense<0.000000e+00> : vector<1xf32>
    %310 = vector.multi_reduction <add>, %309, %cst_98 [1, 2] : vector<1x16x16xf32> to vector<1xf32>
    %311 = vector.shape_cast %310 : vector<1xf32> to vector<1x1x1xf32>
    %312 = vector.extract %311[0, 0, 0] : f32 from vector<1x1x1xf32>
    %313 = vector.broadcast %312 : f32 to vector<1x1xf32>
    %314 = arith.addf %302, %313 : vector<1x1xf32>
    %315 = tpu.iota {dimensions = array<i32: 1>} : vector<1x128xi32>
    %c0_i32 = arith.constant 0 : i32
    %316 = vector.broadcast %c0_i32 : i32 to vector<1x128xi32>
    %317 = arith.cmpi eq, %315, %316 : vector<1x128xi32>
    %318 = arith.extui %317 : vector<1x128xi1> to vector<1x128xi32>
    %319 = arith.sitofp %318 : vector<1x128xi32> to vector<1x128xf32>
    %320 = vector.broadcast %227 : vector<1x1xf32> to vector<1x128xf32>
    %321 = arith.mulf %320, %319 : vector<1x128xf32>
    %c1_i32 = arith.constant 1 : i32
    %322 = vector.broadcast %c1_i32 : i32 to vector<1x128xi32>
    %323 = arith.cmpi eq, %315, %322 : vector<1x128xi32>
    %324 = arith.extui %323 : vector<1x128xi1> to vector<1x128xi32>
    %325 = arith.sitofp %324 : vector<1x128xi32> to vector<1x128xf32>
    %326 = vector.broadcast %314 : vector<1x1xf32> to vector<1x128xf32>
    %327 = arith.mulf %326, %325 : vector<1x128xf32>
    %328 = arith.addf %321, %327 : vector<1x128xf32>
    %c2_i32 = arith.constant 2 : i32
    %329 = vector.broadcast %c2_i32 : i32 to vector<1x128xi32>
    %330 = arith.cmpi eq, %315, %329 : vector<1x128xi32>
    %331 = arith.extui %330 : vector<1x128xi1> to vector<1x128xi32>
    %332 = arith.sitofp %331 : vector<1x128xi32> to vector<1x128xf32>
    %333 = vector.broadcast %245 : vector<1x1xf32> to vector<1x128xf32>
    %334 = arith.mulf %333, %332 : vector<1x128xf32>
    %335 = arith.addf %328, %334 : vector<1x128xf32>
    %c0_99 = arith.constant 0 : index
    %c0_100 = arith.constant 0 : index
    %336 = vector.load %arg9[%c0_99, %c0_100] : memref<1x128xf32, #tpu.memory_space<vmem>>, vector<1x128xf32>
    tpu.vector_store %arg9[%c0_99, %c0_100], %335 {strides = array<i32>} : memref<1x128xf32, #tpu.memory_space<vmem>>, vector<1x128xf32>,
    return
  }
}

</mosaic_0001>

<bundles_post_ra>
// kernel: vrdag_forward.1
= control target key start
LH: loop header
LB: loop body
LE: loop exit
PB: predicated region body
PF: predicated region fallthrough
CT: control target
= control target key end

     0   :  { %15 = vsyncpa [#allocation3], 0  ;;  %s2434_s0 = inlined_call_operand.vmem [shape: f32[16,16], index: 0, kind: input, shape index: {}]   ;;  %s2435_s1 = inlined_call_operand.vmem [shape: f32[16,4], index: 1, kind: input, shape index: {}]   ;;  %s2436_s2 = inlined_call_operand.vmem [shape: f32[16,32], index: 2, kind: input, shape index: {}, may-alias: {2,8}]   ;;  %s2437_s3 = inlined_call_operand.vmem [shape: f32[1,32], index: 3, kind: input, shape index: {}]   ;;  %s2438_s4 = inlined_call_operand.vmem [shape: f32[16,16], index: 4, kind: input, shape index: {}]   ;;  %s2439_s5 = inlined_call_operand.hbm [shape: f32[32,1280], index: 5, kind: input, shape index: {}]   ;;  %s2440_s6 = inlined_call_operand.vmem [shape: f32[1,768], index: 6, kind: input, shape index: {}]   ;;  %s2441_s7 = inlined_call_operand.hbm [shape: f32[64,256], index: 7, kind: input, shape index: {}]   ;;  %s2442_s8 = inlined_call_operand.vmem [shape: f32[16,32], index: 8, kind: output, shape index: {0}, may-alias: {2,8}]   ;;  %s2443_s9 = inlined_call_operand.vmem [shape: f32[1,128], index: 9, kind: output, shape index: {1}]  }
   0x1   :  { %s31_s11 = sshll.u32 %s2439_s5, 4  ;;  %s32_s11 = int_to_ptr.hbm [resolvable:$true] %s31_s11 }
   0x2   :  { %16 = vsyncpa [#allocation5], 0  ;;  %s1822_s12 = smov [#allocation2]   ;;  %s46_s16 = sshll.u32 %s2441_s7, 4  ;;  %s47_s16 = int_to_ptr.hbm [resolvable:$true] %s46_s16 }
   0x3   :  { %s33_s13 = sshll.u32 %s1822_s12, 4  ;;  %s1823_s17 = smov 1280   ;;  %s34_s13 = int_to_ptr.vmem [resolvable:$true] %s33_s13 }
   0x4   :  { %s1824_s18 = smov 80   ;;  %s1825_s19 = smov [#allocation4]  }
   0x5   :  { %39 = dma.hbm_to_vmem [thread:$0]  %s32_s11, 5120, %s34_s13, [#allocation3], %s1823_s17, %s1823_s17, %s1824_s18  }
   0x6   :  { %s48_s20 = sshll.u32 %s1825_s19, 4  ;;  %s1826_s21 = smov 256   ;;  %s49_s20 = int_to_ptr.vmem [resolvable:$true] %s48_s20 }
   0x7   :  { %s1827_s22 = smov 16  }
   0x8   :  { %54 = dma.hbm_to_vmem [thread:$0]  %s47_s16, 2048, %s49_s20, [#allocation5], %s1826_s21, %s1826_s21, %s1827_s22  }
   0x9   :  { %1818 = dma.done.wait [#allocation3], 5120  }
   0xa   :  { %1819 = vsyncadd [#allocation3], 4294962176 }
   0xb   :  { %1820 = dma.done.wait [#allocation5], 2048  }
   0xc   :  { %1821 = vsyncadd [#allocation5], 4294965248  ;;  %v66_v0 = vld [vmem:[%s2435_s1 + $0x8] sm:$0xff]  ;;  %v65_v1 = vld [vmem:[%s2435_s1] sm:$0xff]  ;;  %vm71_vm0 = vcmask 130048   ;;  %vm113_vm1 = vcmask 1043456  }
   0xd   :  { %92 = vmatpush.msra.mxu0 %v66_v0  ;;  %v1904_v2 = vld [vmem:[%s2434_s0] sm:$0xff]  ;;  %v1911_v3 = vld [vmem:[%s2434_s0 + $0x8] sm:$0xff]  ;;  %vm106_vm2 = vcmask 31744   ;;  %v145_v9 = vld [vmem:[#allocation2 + $0xf0] sm:$0xff]  ;;  %s1828_s10 = smov 96   ;;  %vm174_vm3 = vcmask 261120  }
   0xe   :  { %v69_v4 = vld [vmem:[#allocation4] sm:$0xf]  ;;  %193 = vmatpush.msra.mxu3 %v145_v9  ;;  %v143_v18 = vld [vmem:[#allocation2 + $0x50] sm:$0xff]  ;;  %v216_v20 = vld [vmem:[#allocation2 + $0xf8] sm:$0xff]  ;;  %s1829_s17 = smov 64   ;;  %vm229_vm4 = vcmask 523264  }
   0xf   :  { %93 = vmatpush.msra.mxu0 %v65_v1  ;;  %1509 = vmatpush.msk.msra.mxu1 %vm113_vm1, %v69_v4  ;;  %v144_v10 = vld [vmem:[#allocation2 + $0xa0] sm:$0xff]  ;;  %v214_v21 = vld [vmem:[#allocation2 + $0xa8] sm:$0xff]  ;;  %v212_v23 = vld [vmem:[#allocation2 + $0x58] sm:$0xff]  ;;  %vm298_vm5 = vcmask 785408   ;;  %s1830_s23 = smov 112   ;;  %s1831_s7 = smov 32  }
  0x10   :  { %1507 = vmatmul.msk.f32.vlgmr.msra.gmra.mxu0 %vm71_vm0, %v1904_v2  ;;  %194 = vmatpush.msra.mxu3 %v144_v10  ;;  %v1659_v12 = vld [vmem:[%s2440_s6] ss:$0 sm:$0xff]  ;;  %v289_v22 = vld [vmem:[#allocation2 + $0x108] sm:$0xff]  ;;  %v288_v24 = vld [vmem:[#allocation2 + $0xb8] sm:$0xff]  ;;  %s1832_s29 = smov 56   ;;  %s1833_s12 = smov 120  }
  0x11   :  { %171 = vrot.lane.b32.xlu0 %v1659_v12, %s1828_s10  ;;  %v142_v19 = vld [vmem:[#allocation2] sm:$0xff]  ;;  %252 = vmatpush.msrb.mxu1 %v216_v20  ;;  %v287_v25 = vld [vmem:[#allocation2 + $0x68] sm:$0xff]  ;;  %v286_v36 = vld [vmem:[#allocation2 + $0x18] sm:$0xff]  ;;  %s1834_s13 = smov 60  }
  0x12   :  { %195 = vmatpush.msra.mxu3 %v143_v18  ;;  %v210_v26 = vld [vmem:[#allocation2 + $0x8] sm:$0xff]  ;;  %v1929_v27 = vld [vmem:[%s2436_s2] sm:$0xff]  ;;  %v502_v41 = vld [vmem:[#allocation4 + $0x10] sm:$0xff] }
  0x13   :  { %253 = vmatpush.msrb.mxu1 %v214_v21  ;;  %v1938_v32 = vld [vmem:[%s2440_s6] sm:$0x7]  ;;  %v1945_v35 = vld [vmem:[%s2436_s2 + $0x8] sm:$0xff]  ;;  %v336_v52 = vld [vmem:[#allocation2 + $0xd0] sm:$0xff] }
  0x14   :  { %196 = vmatpush.msra.mxu3 %v142_v19  ;;  %v221_v33 = vperm.slane %v1938_v32, 1  ;;  %v220_v34 = vperm.slane %v1938_v32, 0  ;;  %v290_v37 = vld [vmem:[%s2440_s6 + $0x2] sm:$0x3]  ;;  %v1660_v44 = vld [vmem:[%s2437_s3] ss:$0 sm:$0xff] }
  0x15   :  { %254 = vmatpush.msrb.mxu1 %v212_v23  ;;  %v292_v38 = vperm.slane %v290_v37, 0  ;;  %v293_v39 = vperm.slane %v290_v37, 1  ;;  %v501_v40 = vld [vmem:[#allocation4] sm:$0xff]  ;;  %v334_v62 = vld [vmem:[#allocation2 + $0x30] sm:$0xff] }
  0x16   :  { %225 = vrot.lane.b32.xlu1 %v221_v33, %s1829_s17  ;;  %v1956_v42 = vpack.i.bf16 %v501_v40, %v502_v41  ;;  %v337_v51 = vld [vmem:[#allocation2 + $0x120] sm:$0xff] }
  0x17   :  { %255 = vmatpush.msrb.mxu1 %v210_v26  ;;  %296 = vrot.lane.b32.xlu2 %v293_v39, %s1828_s10  ;;  %v335_v53 = vld [vmem:[#allocation2 + $0x80] sm:$0xff] }
  0x18   :  { %1508 = vmatmul.msk.f32.gmra.mxu0 %vm71_vm0, %v1911_v3  ;;  %362 = vmatpush.msrb.mxu3 %v337_v51  ;;  %v1980_v63 = vld [vmem:[%s2440_s6 + $0x3] ss:$0 sm:$0xff] }
  0x19   :  { %223 = vrot.lane.b32.xlu0 %v220_v34, %s1829_s17 }
  0x1a   :  { %363 = vmatpush.msrb.mxu3 %v336_v52 }
  0x1c   :  { %364 = vmatpush.msrb.mxu3 %v335_v53 }
  0x1e   :  { %294 = vrot.lane.b32.xlu1 %v292_v38, %s1828_s10  ;;  %365 = vmatpush.msrb.mxu3 %v334_v62 }
  0x1f   :  { %341 = vrot.lane.b32.xlu2 %v1980_v63, %s1828_s10 }
  0x26   :  { %1585 = vrot.lane.b32.xlu1 %v1956_v42, %s1828_s10 }
  0x83   :  { %v172_v43 = vpop.permute.xlu0 %171 }
  0x88   :  { %v1965_v55 = vpop.permute.xlu1 %225 }
  0x8b   :  { %v224_v56 = vpop.permute.xlu0 %223 }
  0x8c   :  { %v230_v57 = vsel %vm229_vm4, %v224_v56, %v1965_v55 }
  0x8d   :  { %v95_v5 = vpop.f32.mrf.mxu0 }
  0x8e   :  { %v101_v6 = vadd.f32 %v95_v5, %v65_v1 }
  0x90   :  { %1510 = vmatmul.msk.f32.vlgmr.msra.gmra.mxu1 %vm106_vm2, %v101_v6  ;;  %v295_v1 = vpop.permute.xlu1 %294 }
  0x95   :  { %v98_v7 = vpop.f32.mrf.mxu0 }
  0x96   :  { %v102_v8 = vadd.f32 %v98_v7, %v66_v0  ;;  %v297_v0 = vpop.permute.xlu2 %296 }
  0x97   :  { %v299_v4 = vsel %vm298_vm5, %v295_v1, %v297_v0 }
  0x98   :  { %1511 = vmatmul.msk.f32.gmra.mxu1 %vm106_vm2, %v102_v8 }
  0x9e   :  { %v342_v19 = vpop.permute.xlu2 %341 }
  0xa0   :  { %1516 = vmatmul.msk.f32.vlgmr.msrb.gmra.mxu1 %vm174_vm3, %v1929_v27 }
  0xa8   :  { %1517 = vmatmul.msk.f32.gmra.mxu1 %vm174_vm3, %v1945_v35 }
 0x10d   :  { %v134_v11 = vpop.f32.mrf.mxu1 }
 0x10e   :  { %v135_v14 = vadd.f32 %v1659_v12, %v134_v11 }
 0x110   :  { %v140_v17 = vmax.f32 %v135_v14, 0.0  ;;  %v413_v14 = vld [vmem:[#allocation2 + $0xd8] sm:$0xff] }
 0x115   :  { %v137_v13 = vpop.f32.mrf.mxu1 }
 0x116   :  { %v138_v15 = vadd.f32 %v1659_v12, %v137_v13  ;;  %v414_v13 = vld [vmem:[#allocation2 + $0x128] sm:$0xff] }
 0x117   :  { %440 = vmatpush.msra.mxu1 %v414_v13 }
 0x118   :  { %v141_v16 = vmax.f32 %v138_v15, 0.0  ;;  %v412_v15 = vld [vmem:[#allocation2 + $0x88] sm:$0xff] }
 0x119   :  { %441 = vmatpush.msra.mxu1 %v413_v14  ;;  %v551_v14 = vld [vmem:[#allocation2 + $0x110] sm:$0xff] }
 0x11a   :  { %160 = vmatpush.msra.mxu2 %v141_v16 }
 0x11b   :  { %442 = vmatpush.msra.mxu1 %v412_v15  ;;  %v549_v15 = vld [vmem:[#allocation2 + $0xc0] sm:$0xff] }
 0x11c   :  { %161 = vmatpush.msra.mxu2 %v140_v17 }
 0x11d   :  { %1512 = vmatmul.msk.f32.vlgmr.msra.gmra.mxu2 %vm71_vm0, %v1904_v2  ;;  %v257_v54 = vpop.f32.mrf.mxu1 }
 0x11e   :  { %319 = vmatpush.msrb.mxu2 %v289_v22  ;;  %v1969_v58 = vadd.f32 %v257_v54, %v230_v57 }
 0x120   :  { %320 = vmatpush.msrb.mxu2 %v288_v24  ;;  %v409_v59 = vmax.f32 %v1969_v58, 0.0 }
 0x122   :  { %321 = vmatpush.msrb.mxu2 %v287_v25  ;;  %417 = vrot.lane.b32.xlu1 %v409_v59, %s1828_s10 }
 0x124   :  { %322 = vmatpush.msrb.mxu2 %v286_v36 }
 0x125   :  { %1513 = vmatmul.msk.f32.gmra.mxu2 %vm71_vm0, %v1911_v3  ;;  %v260_v60 = vpop.f32.mrf.mxu1 }
 0x126   :  { %v1973_v61 = vadd.f32 %v260_v60, %v230_v57  ;;  %571 = vmatpush.msra.mxu2 %v551_v14 }
 0x128   :  { %v410_v1 = vmax.f32 %v1973_v61, 0.0  ;;  %572 = vmatpush.msra.mxu2 %v549_v15 }
 0x12a   :  { %609 = vrot.lane.b32.xlu1 %v1973_v61, %s1829_s17 }
 0x1a0   :  { %v163_v28 = vpop.f32.mrf.mxu2 }
 0x1a1   :  { %v169_v29 = vadd.f32 %v163_v28, %v140_v17  ;;  %v1995_v17 = vpop.permute.xlu1 %1585 }
 0x1a3   :  { %1514 = vmatmul.msk.f32.vlgmr.msra.gmra.mxu3 %vm174_vm3, %v169_v29 }
 0x1a8   :  { %v166_v30 = vpop.f32.mrf.mxu2 }
 0x1a9   :  { %v170_v31 = vadd.f32 %v166_v30, %v141_v16  ;;  %v411_v16 = vld [vmem:[#allocation2 + $0x38] sm:$0xff]  ;;  %v418_v18 = vpop.permute.xlu1 %417 }
 0x1aa   :  { %443 = vmatpush.msra.mxu1 %v411_v16  ;;  %v552_v16 = vld [vmem:[#allocation2 + $0x118] sm:$0xff] }
 0x1ab   :  { %1515 = vmatmul.msk.f32.gmra.mxu3 %vm174_vm3, %v170_v31  ;;  %1524 = vmatmul.msk.f32.vlgmr.msra.gmra.mxu1 %vm174_vm3, %v418_v18  ;;  %v550_v18 = vld [vmem:[#allocation2 + $0xc8] sm:$0xff] }
 0x1ac   :  { %594 = vmatpush.msra.mxu3 %v552_v16 }
 0x1ae   :  { %595 = vmatpush.msra.mxu3 %v550_v18 }
 0x226   :  { %v198_v45 = vpop.f32.mrf.mxu3 }
 0x227   :  { %v199_v46 = vadd.f32 %v198_v45, %v172_v43  ;;  %v217_v45 = vld [vmem:[#allocation2 + $0x100] sm:$0xff] }
 0x228   :  { %275 = vmatpush.msrb.mxu0 %v217_v45  ;;  %v657_v45 = vld [vmem:[#allocation4 + $0x30] sm:$0xff] }
 0x229   :  { %v208_v47 = vadd.f32 %v1660_v44, %v199_v46  ;;  %v215_v46 = vld [vmem:[#allocation2 + $0xb0] sm:$0xff] }
 0x22a   :  { %276 = vmatpush.msrb.mxu0 %v215_v46 }
 0x22b   :  { %1520 = vmatmul.msk.f32.vlgmr.msrb.gmra.mxu2 %vm174_vm3, %v208_v47 }
 0x22e   :  { %v201_v48 = vpop.f32.mrf.mxu3 }
 0x22f   :  { %v202_v49 = vadd.f32 %v201_v48, %v172_v43 }
 0x231   :  { %v209_v50 = vadd.f32 %v1660_v44, %v202_v49  ;;  %v213_v49 = vld [vmem:[#allocation2 + $0x60] sm:$0xff] }
 0x232   :  { %277 = vmatpush.msrb.mxu0 %v213_v49 }
 0x233   :  { %1521 = vmatmul.msk.f32.gmra.mxu2 %vm174_vm3, %v209_v50 }
 0x2ae   :  { %v324_v5 = vpop.f32.mrf.mxu2 }
 0x2af   :  { %v1985_v6 = vadd.f32 %v324_v5, %v299_v4  ;;  %v1588_v5 = vunpack.i.h.bf16 %v1995_v17 }
 0x2b1   :  { %v330_v7 = vadd.f32 %v1985_v6, %v1969_v58 }
 0x2b3   :  { %v332_v8 = vmax.f32 %v330_v7, 0.0  ;;  %v211_v7 = vld [vmem:[#allocation2 + $0x10] sm:$0xff] }
 0x2b4   :  { %278 = vmatpush.msrb.mxu0 %v211_v7 }
 0x2b5   :  { %1522 = vmatmul.msk.f32.vlgmr.msrb.gmra.mxu3 %vm174_vm3, %v332_v8  ;;  %1518 = vmatmul.msk.f32.vlgmr.msrb.gmra.mxu0 %vm174_vm3, %v1929_v27  ;;  %v488_v27 = vld [vmem:[%s2438_s4 + $0x8] sm:$0xff] }
 0x2b6   :  { %v327_v9 = vpop.f32.mrf.mxu2 }
 0x2b7   :  { %v1990_v10 = vadd.f32 %v327_v9, %v299_v4  ;;  %v1587_v4 = vunpack.i.l.bf16 %v1995_v17  ;;  %v547_v17 = vld [vmem:[#allocation2 + $0x70] sm:$0xff] }
 0x2b8   :  { %573 = vmatpush.msra.mxu2 %v547_v17 }
 0x2b9   :  { %v331_v11 = vadd.f32 %v1990_v10, %v1973_v61  ;;  %534 = vmatpush.msra.mxu0 %v1587_v4 }
 0x2bb   :  { %v333_v12 = vmax.f32 %v331_v11, 0.0  ;;  %535 = vmatpush.msra.mxu0 %v1588_v5  ;;  %v1662_v5 = vld [vmem:[%s2440_s6 + $0x4] ss:$0 sm:$0xff] }
 0x2bd   :  { %1523 = vmatmul.msk.f32.gmra.mxu3 %vm174_vm3, %v333_v12  ;;  %1519 = vmatmul.msk.f32.gmra.mxu0 %vm174_vm3, %v1945_v35 }
 0x338   :  { %v367_v20 = vpop.f32.mrf.mxu3 }
 0x339   :  { %v1998_v21 = vadd.f32 %v367_v20, %v342_v19  ;;  %v545_v20 = vld [vmem:[#allocation2 + $0x20] sm:$0xff] }
 0x33a   :  { %574 = vmatpush.msra.mxu2 %v545_v20 }
 0x33b   :  { %v379_v22 = vand.u32 2147483647, %v1998_v21  ;;  %v373_v47 = vmax.f32 %v1998_v21, 0.0  ;;  %vm375_vm7 = vcmp.ne.f32.partialorder %v1998_v21, %v1998_v21 }
 0x33d   :  { %v381_v23 = vsub.f32 0.0, %v379_v22  ;;  %v546_v22 = vld [vmem:[#allocation2 + $0x28] sm:$0xff] }
 0x33f   :  { %v383_v24 = vmul.f32 1.442695, %v381_v23  ;;  %v2043_v23 = vpop.f32.mrf.mxu0 }
 0x340   :  { %v370_v25 = vpop.f32.mrf.mxu3 }
 0x341   :  { %1664 = vpow2.f32 %v383_v24  ;;  %v2001_v26 = vadd.f32 %v370_v25, %v342_v19  ;;  %v548_v19 = vld [vmem:[#allocation2 + $0x78] sm:$0xff]  ;;  %v620_v24 = vld [vmem:[#allocation2 + $0x130] sm:$0xff]  ;;  %v619_v25 = vld [vmem:[#allocation2 + $0xe0] sm:$0xff] }
 0x342   :  { %596 = vmatpush.msra.mxu3 %v548_v19  ;;  %643 = vmatpush.msrb.mxu1 %v620_v24 }
 0x343   :  { %v380_v28 = vand.u32 2147483647, %v2001_v26  ;;  %v374_v59 = vmax.f32 %v2001_v26, 0.0  ;;  %vm376_vm9 = vcmp.ne.f32.partialorder %v2001_v26, %v2001_v26 }
 0x344   :  { %597 = vmatpush.msra.mxu3 %v546_v22  ;;  %644 = vmatpush.msrb.mxu1 %v619_v25 }
 0x345   :  { %v382_v29 = vsub.f32 0.0, %v380_v28  ;;  %v618_v28 = vld [vmem:[#allocation2 + $0x90] sm:$0xff] }
 0x346   :  { %645 = vmatpush.msrb.mxu1 %v618_v28 }
 0x347   :  { %v1665_v30 = vpop.eup %1664  ;;  %v385_v31 = vmul.f32 1.442695, %v382_v29  ;;  %v2045_v29 = vpop.f32.mrf.mxu0 }
 0x348   :  { %v387_v33 = vadd.f32 1.0, %v1665_v30  ;;  %v390_v34 = vmul.f32 -0.5, %v1665_v30  ;;  %v393_v37 = vand.u32 2147483647, %v1665_v30 }
 0x349   :  { %1666 = vpow2.f32 %v385_v31 }
 0x34a   :  { %1668 = vlog2.f32 %v387_v33  ;;  %v391_v36 = vadd.f32 1.0, %v390_v34  ;;  %vm394_vm6 = vcmp.lt.f32.partialorder %v393_v37, 0.0004427343 }
 0x34c   :  { %v392_v43 = vmul.f32 %v1665_v30, %v391_v36 }
 0x34f   :  { %v1667_v38 = vpop.eup %1666 }
 0x350   :  { %v1669_v39 = vpop.eup %1668  ;;  %v396_v40 = vadd.f32 1.0, %v1667_v38  ;;  %v399_v44 = vmul.f32 -0.5, %v1667_v38  ;;  %v402_v53 = vand.u32 2147483647, %v1667_v38 }
 0x351   :  { %v389_v41 = vmul.f32 0.6931472, %v1669_v39  ;;  %v617_v39 = vld [vmem:[#allocation2 + $0x40] sm:$0xff] }
 0x352   :  { %1670 = vlog2.f32 %v396_v40  ;;  %v400_v51 = vadd.f32 1.0, %v399_v44  ;;  %vm403_vm8 = vcmp.lt.f32.partialorder %v402_v53, 0.0004427343  ;;  %646 = vmatpush.msrb.mxu1 %v617_v39  ;;  %v658_v40 = vld [vmem:[#allocation4 + $0x40] sm:$0xff] }
 0x353   :  { %v395_v48 = vsel %vm394_vm6, %v392_v43, %v389_v41  ;;  %v659_v41 = vld [vmem:[#allocation4 + $0x50] sm:$0xff]  ;;  %v656_v43 = vld [vmem:[#allocation4 + $0x20] sm:$0xff] }
 0x354   :  { %v405_v50 = vadd.f32 %v395_v48, %v373_v47  ;;  %v401_v57 = vmul.f32 %v1667_v38, %v400_v51  ;;  %v2051_v44 = vpack.i.bf16 %v658_v40, %v659_v41  ;;  %v2053_v46 = vpack.i.bf16 %v656_v43, %v657_v45  ;;  %v610_v51 = vpop.permute.xlu1 %609 }
 0x356   :  { %v2008_v52 = vsel %vm375_vm7, %v1998_v21, %v405_v50  ;;  %1600 = vrot.lane.b32.xlu1 %v2053_v46, %s1829_s17 }
 0x357   :  { %491 = vrot.lane.b32.xlu0 %v2008_v52, %s1830_s23 }
 0x358   :  { %v1671_v54 = vpop.eup %1670 }
 0x359   :  { %v398_v56 = vmul.f32 0.6931472, %v1671_v54 }
 0x35b   :  { %v404_v60 = vsel %vm403_vm8, %v401_v57, %v398_v56 }
 0x35c   :  { %v406_v62 = vadd.f32 %v404_v60, %v374_v59  ;;  %v660_v59 = vld [vmem:[#allocation4 + $0x60] sm:$0xff]  ;;  %v661_v60 = vld [vmem:[#allocation4 + $0x70] sm:$0xff] }
 0x35e   :  { %v2016_v0 = vsel %vm376_vm9, %v2001_v26, %v406_v62  ;;  %v2075_v62 = vpack.i.bf16 %v660_v59, %v661_v60 }
 0x35f   :  { %511 = vrot.lane.b32.xlu0 %v1980_v63, %s1831_s7  ;;  %493 = vrot.lane.b32.xlu2 %v2016_v0, %s1830_s23 }
 0x367   :  { %607 = vrot.lane.b32.xlu0 %v1969_v58, %s1829_s17  ;;  %419 = vrot.lane.b32.xlu2 %v410_v1, %s1828_s10  ;;  %v487_v58 = vld [vmem:[%s2438_s4] sm:$0xff]  ;;  %v2079_v1 = vpop.f32.mrf.mxu1 }
 0x36f   :  { %1595 = vrot.lane.b32.xlu0 %v2051_v44, %s1829_s17  ;;  %1590 = vrot.lane.b32.xlu2 %v2075_v62, %s1829_s17 }
 0x377   :  { %1605 = vrot.lane.b32.xlu2 %v1956_v42, %s1829_s17 }
 0x3b9   :  { %v494_v61 = vpop.permute.xlu2 %493 }
 0x3ba   :  { %v498_v13 = vmul.f32 %v494_v61, %v488_v27 }
 0x3bc   :  { %v500_v35 = vadd.f32 %v498_v13, %v2001_v26 }
 0x3c1   :  { %v420_v8 = vpop.permute.xlu2 %419 }
 0x3c2   :  { %1525 = vmatmul.msk.f32.gmra.mxu1 %vm174_vm3, %v420_v8 }
 0x3c9   :  { %v492_v9 = vpop.permute.xlu0 %491 }
 0x3ca   :  { %v497_v11 = vmul.f32 %v492_v9, %v487_v58  ;;  %v1591_v9 = vpop.permute.xlu2 %1590 }
 0x3cb   :  { %v1592_v27 = vunpack.i.l.bf16 %v1591_v9 }
 0x3cc   :  { %v499_v12 = vadd.f32 %v497_v11, %v1998_v21 }
 0x3cd   :  { %715 = vmatpush.msrb.mxu0 %v1592_v27 }
 0x3ce   :  { %1526 = vmatmul.msk.f32.vlgmr.msra.gmra.mxu0 %vm71_vm0, %v499_v12  ;;  %v1593_v12 = vunpack.i.h.bf16 %v1591_v9 }
 0x3d0   :  { %716 = vmatpush.msrb.mxu0 %v1593_v12 }
 0x3d1   :  { %v512_v30 = vpop.permute.xlu0 %511 }
 0x3d2   :  { %v1606_v16 = vpop.permute.xlu2 %1605 }
 0x3d3   :  { %v1607_v18 = vunpack.i.l.bf16 %v1606_v16  ;;  %v1608_v19 = vunpack.i.h.bf16 %v1606_v16 }
 0x3d6   :  { %1527 = vmatmul.msk.f32.gmra.mxu0 %vm71_vm0, %v500_v35  ;;  %v1601_v35 = vpop.permute.xlu1 %1600 }
 0x3d7   :  { %v1602_v15 = vunpack.i.l.bf16 %v1601_v35  ;;  %v1603_v17 = vunpack.i.h.bf16 %v1601_v35 }
 0x3d9   :  { %v608_v47 = vpop.permute.xlu0 %607 }
 0x3e1   :  { %v1596_v11 = vpop.permute.xlu0 %1595 }
 0x3e2   :  { %v1597_v13 = vunpack.i.l.bf16 %v1596_v11  ;;  %v1598_v14 = vunpack.i.h.bf16 %v1596_v11 }
 0x3e4   :  { %717 = vmatpush.msrb.mxu0 %v1597_v13 }
 0x3e6   :  { %718 = vmatpush.msrb.mxu0 %v1598_v14 }
 0x3e8   :  { %719 = vmatpush.msrb.mxu0 %v1602_v15 }
 0x3ea   :  { %720 = vmatpush.msrb.mxu0 %v1603_v17 }
 0x3ec   :  { %721 = vmatpush.msrb.mxu0 %v1607_v18 }
 0x3ee   :  { %722 = vmatpush.msrb.mxu0 %v1608_v19 }
 0x43f   :  { %v2083_v4 = vpop.f32.mrf.mxu1 }
 0x44b   :  { %v537_v31 = vpop.f32.mrf.mxu0 }
 0x44c   :  { %v538_v33 = vadd.f32 %v537_v31, %v512_v30  ;;  %v2105_v31 = vld [vmem:[%s2440_s6 + $0x5] ss:$0 sm:$0xff] }
 0x44e   :  { %v543_v34 = vmax.f32 %v538_v33, 0.0  ;;  %v222_v33 = vperm.slane %v1938_v32, 2 }
 0x450   :  { %1528 = vmatmul.msk.f32.vlgmr.msra.gmra.mxu2 %vm174_vm3, %v543_v34  ;;  %1530 = vmatmul.msk.f32.vlgmr.msra.gmra.mxu3 %vm174_vm3, %v543_v34 }
 0x453   :  { %v540_v36 = vpop.f32.mrf.mxu0 }
 0x454   :  { %v541_v37 = vadd.f32 %v540_v36, %v512_v30 }
 0x456   :  { %v544_v38 = vmax.f32 %v541_v37, 0.0 }
 0x458   :  { %1529 = vmatmul.msk.f32.gmra.mxu2 %vm174_vm3, %v544_v38  ;;  %1531 = vmatmul.msk.f32.gmra.mxu3 %vm174_vm3, %v544_v38 }
 0x4d3   :  { %v2059_v48 = vpop.f32.mrf.mxu2 }
 0x4d4   :  { %v2062_v49 = vadd.f32 %v608_v47, %v2059_v48  ;;  %v663_v47 = vld [vmem:[#allocation4 + $0x8] sm:$0xff] }
 0x4d6   :  { %v615_v50 = vmax.f32 %v2062_v49, 0.0 }
 0x4d8   :  { %1532 = vmatmul.msk.f32.vlgmr.msrb.gmra.mxu1 %vm174_vm3, %v615_v50  ;;  %v664_v50 = vld [vmem:[#allocation4 + $0x18] sm:$0xff] }
 0x4db   :  { %v2066_v53 = vpop.f32.mrf.mxu2 }
 0x4dc   :  { %v2069_v54 = vadd.f32 %v610_v51, %v2066_v53  ;;  %v1634_v51 = vpack.i.bf16 %v663_v47, %v664_v50 }
 0x4de   :  { %v1629_v56 = vpack.i.bf16 %v2062_v49, %v2069_v54  ;;  %v616_v57 = vmax.f32 %v2069_v54, 0.0 }
 0x4e0   :  { %1533 = vmatmul.msk.f32.gmra.mxu1 %vm174_vm3, %v616_v57  ;;  %v662_v57 = vld [vmem:[#allocation4 + $0x8] sm:$0xf] }
 0x4e1   :  { %1536 = vmatpush.msk.msrb.mxu2 %vm113_vm1, %v662_v57 }
 0x555   :  { %v648_v7 = vpop.f32.mrf.mxu1 }
 0x556   :  { %v2088_v61 = vadd.f32 %v1662_v5, %v648_v7 }
 0x558   :  { %667 = vrot.lane.b32.xlu0 %v2088_v61, %s1829_s17 }
 0x55d   :  { %v651_v8 = vpop.f32.mrf.mxu1 }
 0x55e   :  { %v2092_v58 = vadd.f32 %v1662_v5, %v651_v8 }
 0x560   :  { %669 = vrot.lane.b32.xlu1 %v2092_v58, %s1829_s17 }
 0x5ca   :  { %v668_v20 = vpop.permute.xlu0 %667 }
 0x5cb   :  { %1534 = vmatmul.msk.f32.vlgmr.msrb.gmra.mxu0 %vm229_vm4, %v668_v20 }
 0x5d2   :  { %v670_v22 = vpop.permute.xlu1 %669 }
 0x5d3   :  { %1535 = vmatmul.msk.f32.gmra.mxu0 %vm229_vm4, %v670_v22 }
 0x648   :  { %v724_v24 = vpop.f32.mrf.mxu0 }
 0x649   :  { %v730_v25 = vsel %vm106_vm2, %v724_v24, -inf }
 0x64a   :  { %731 = vmax.xlane.f32.xlu2 %v730_v25 }
 0x650   :  { %v727_v28 = vpop.f32.mrf.mxu0 }
 0x651   :  { %v733_v30 = vsel %vm106_vm2, %v727_v28, -inf }
 0x652   :  { %734 = vmax.xlane.f32.xlu0 %v733_v30 }
 0x666   :  { %1615 = vrot.lane.b32.xlu0 %v2051_v44, %s1832_s29 }
 0x66e   :  { %1625 = vrot.lane.b32.xlu0 %v1956_v42, %s1832_s29 }
 0x676   :  { %894 = vrot.lane.b32.xlu0 %v2105_v31, %s1833_s12 }
 0x67e   :  { %1650 = vrot.lane.b32.xlu0 %v2053_v46, %s1834_s13 }
 0x686   :  { %227 = vrot.lane.b32.xlu0 %v222_v33, %s1829_s17 }
 0x6bd   :  { %v732_v34 = vpop.xlane.xlu2 %731 }
 0x6be   :  { %v2112_v36 = vsub.f32 %v724_v24, %v732_v34 }
 0x6c0   :  { %v738_v37 = vmul.f32 1.442695, %v2112_v36 }
 0x6c2   :  { %1672 = vpow2.f32 %v738_v37 }
 0x6c5   :  { %v735_v38 = vpop.xlane.xlu0 %734 }
 0x6c6   :  { %v2115_v39 = vsub.f32 %v727_v28, %v735_v38 }
 0x6c8   :  { %v1673_v40 = vpop.eup %1672  ;;  %v740_v41 = vmul.f32 1.442695, %v2115_v39 }
 0x6c9   :  { %v742_v43 = vsel %vm106_vm2, %v1673_v40, 0.0 }
 0x6ca   :  { %1674 = vpow2.f32 %v740_v41  ;;  %743 = vadd.xlane.f32.xlu1 %v742_v43 }
 0x6d0   :  { %v1675_v45 = vpop.eup %1674 }
 0x6d1   :  { %v745_v32 = vsel %vm106_vm2, %v1675_v45, 0.0 }
 0x6d2   :  { %746 = vadd.xlane.f32.xlu2 %v745_v32 }
 0x6e3   :  { %1620 = vrot.lane.b32.xlu1 %v2053_v46, %s1832_s29  ;;  %v599_v46 = vpop.f32.mrf.mxu3 }
 0x6ea   :  { %1610 = vrot.lane.b32.xlu2 %v2075_v62, %s1832_s29 }
 0x6eb   :  { %1635 = vrot.lane.b32.xlu1 %v1634_v51, %s1829_s17 }
 0x6f2   :  { %1630 = vrot.lane.b32.xlu2 %v1629_v56, %s1828_s10 }
 0x6f3   :  { %1645 = vrot.lane.b32.xlu1 %v2051_v44, %s1834_s13 }
 0x6fa   :  { %1640 = vrot.lane.b32.xlu2 %v2075_v62, %s1834_s13 }
 0x6fb   :  { %421 = vrot.lane.b32.xlu1 %v1980_v63, %s1829_s17 }
 0x702   :  { %1655 = vrot.lane.b32.xlu2 %v1956_v42, %s1834_s13 }
 0x703   :  { %1002 = vrot.lane.b32.xlu1 %v2059_v48, %s1828_s10  ;;  %v1616_v48 = vpop.permute.xlu0 %1615 }
 0x704   :  { %v1618_v8 = vunpack.i.h.bf16 %v1616_v48 }
 0x70b   :  { %1004 = vrot.lane.b32.xlu1 %v599_v46, %s1828_s10  ;;  %v1626_v35 = vpop.permute.xlu0 %1625 }
 0x70c   :  { %v1627_v14 = vunpack.i.l.bf16 %v1626_v35  ;;  %v1628_v16 = vunpack.i.h.bf16 %v1626_v35 }
 0x713   :  { %1006 = vrot.lane.b32.xlu1 %v2066_v53, %s1828_s10  ;;  %v1617_v53 = vunpack.i.l.bf16 %v1616_v48 }
 0x73d   :  { %v2137_v49 = vpop.xlane.xlu1 %743 }
 0x73e   :  { %1676 = vrcp.f32 %v2137_v49 }
 0x744   :  { %v1677_v44 = vpop.eup %1676 }
 0x745   :  { %v750_v54 = vmul.f32 %v1677_v44, %v1673_v40  ;;  %v2140_v56 = vpop.xlane.xlu2 %746 }
 0x746   :  { %1678 = vrcp.f32 %v2140_v56 }
 0x747   :  { %1537 = vmatmul.msk.f32.vlgmr.msrb.gmra.mxu2 %vm106_vm2, %v750_v54 }
 0x74c   :  { %v1679_v63 = vpop.eup %1678 }
 0x74d   :  { %v1611_v59 = vpop.permute.xlu2 %1610  ;;  %v751_v60 = vmul.f32 %v1679_v63, %v1675_v45 }
 0x74e   :  { %v1613_v5 = vunpack.i.h.bf16 %v1611_v59  ;;  %v1612_v7 = vunpack.i.l.bf16 %v1611_v59 }
 0x74f   :  { %1538 = vmatmul.msk.f32.gmra.mxu2 %vm106_vm2, %v751_v60 }
 0x750   :  { %868 = vmatpush.msrb.mxu3 %v1612_v7 }
 0x752   :  { %869 = vmatpush.msrb.mxu3 %v1613_v5 }
 0x754   :  { %870 = vmatpush.msrb.mxu3 %v1617_v53 }
 0x755   :  { %v1621_v9 = vpop.permute.xlu1 %1620  ;;  %v1631_v11 = vpop.permute.xlu2 %1630 }
 0x756   :  { %v1623_v12 = vunpack.i.h.bf16 %v1621_v9  ;;  %v1622_v27 = vunpack.i.l.bf16 %v1621_v9  ;;  %v1632_v13 = vunpack.i.l.bf16 %v1631_v11  ;;  %871 = vmatpush.msrb.mxu3 %v1618_v8  ;;  %v1633_v15 = vunpack.i.h.bf16 %v1631_v11 }
 0x758   :  { %917 = vmatpush.msra.mxu1 %v1632_v13  ;;  %872 = vmatpush.msrb.mxu3 %v1622_v27 }
 0x75a   :  { %918 = vmatpush.msra.mxu1 %v1633_v15  ;;  %873 = vmatpush.msrb.mxu3 %v1623_v12 }
 0x75c   :  { %874 = vmatpush.msrb.mxu3 %v1627_v14 }
 0x75d   :  { %v1636_v17 = vpop.permute.xlu1 %1635 }
 0x75e   :  { %v1638_v18 = vunpack.i.h.bf16 %v1636_v17  ;;  %v1637_v19 = vunpack.i.l.bf16 %v1636_v17  ;;  %875 = vmatpush.msrb.mxu3 %v1628_v16 }
 0x760   :  { %1270 = vmatpush.msra.mxu2 %v1637_v19  ;;  %v1539_v19 = vmul.f32 -1.442695, %v2088_v61 }
 0x762   :  { %1271 = vmatpush.msra.mxu2 %v1638_v18 }
 0x763   :  { %1553 = vmatmul.msk.f32.vlgmr.msra.gmra.mxu2 %vm71_vm0, %v1904_v2 }
 0x765   :  { %v2149_v20 = vpop.permute.xlu1 %1645 }
 0x76b   :  { %1554 = vmatmul.msk.f32.gmra.mxu2 %vm71_vm0, %v1911_v3 }
 0x76d   :  { %v422_v22 = vpop.permute.xlu1 %421 }
 0x76e   :  { %v2156_v24 = vadd.f32 %v2079_v1, %v422_v22  ;;  %v2159_v25 = vadd.f32 %v2083_v4, %v422_v22  ;;  %v1540_v22 = vmul.f32 -1.442695, %v2092_v58 }
 0x770   :  { %v457_v62 = vand.u32 2147483647, %v2156_v24  ;;  %v458_v28 = vand.u32 2147483647, %v2159_v25  ;;  %v451_v48 = vmax.f32 %v2156_v24, 0.0  ;;  %v452_v59 = vmax.f32 %v2159_v25, 0.0 }
 0x771   :  { %vm453_vm12 = vcmp.ne.f32.partialorder %v2156_v24, %v2156_v24  ;;  %vm454_vm13 = vcmp.ne.f32.partialorder %v2159_v25, %v2159_v25 }
 0x772   :  { %v459_v2 = vsub.f32 0.0, %v457_v62  ;;  %v460_v30 = vsub.f32 0.0, %v458_v28 }
 0x774   :  { %v461_v33 = vmul.f32 1.442695, %v459_v2  ;;  %v463_v34 = vmul.f32 1.442695, %v460_v30 }
 0x775   :  { %v1003_v37 = vpop.permute.xlu1 %1002 }
 0x776   :  { %1680 = vpow2.f32 %v461_v33 }
 0x777   :  { %1682 = vpow2.f32 %v463_v34  ;;  %v2198_v34 = vpop.permute.xlu0 %894 }
 0x77c   :  { %v1681_v42 = vpop.eup %1680 }
 0x77d   :  { %v1683_v3 = vpop.eup %1682  ;;  %v1005_v38 = vpop.permute.xlu1 %1004  ;;  %v465_v40 = vadd.f32 1.0, %v1681_v42  ;;  %v468_v41 = vmul.f32 -0.5, %v1681_v42  ;;  %v471_v47 = vand.u32 2147483647, %v1681_v42 }
 0x77e   :  { %v2164_v1 = vsel %vm298_vm5, %v1003_v37, %v1005_v38  ;;  %v474_v4 = vadd.f32 1.0, %v1683_v3  ;;  %v477_v43 = vmul.f32 -0.5, %v1683_v3  ;;  %v480_v50 = vand.u32 2147483647, %v1683_v3  ;;  %v1641_v38 = vpop.permute.xlu2 %1640 }
 0x77f   :  { %1684 = vlog2.f32 %v465_v40  ;;  %v469_v45 = vadd.f32 1.0, %v468_v41  ;;  %vm472_vm10 = vcmp.lt.f32.partialorder %v471_v47, 0.0004427343  ;;  %v2202_v37 = vsub.f32 0.0, %v2088_v61 }
 0x780   :  { %1686 = vlog2.f32 %v474_v4  ;;  %v478_v32 = vadd.f32 1.0, %v477_v43  ;;  %vm481_vm11 = vcmp.lt.f32.partialorder %v480_v50, 0.0004427343  ;;  %v1643_v41 = vunpack.i.h.bf16 %v1641_v38 }
 0x781   :  { %v470_v44 = vmul.f32 %v1681_v42, %v469_v45  ;;  %1688 = vlog2.f32 %v2008_v52  ;;  %v1289_v40 = vand.u32 2147483647, %v2202_v37  ;;  %v1642_v43 = vunpack.i.l.bf16 %v1641_v38 }
 0x782   :  { %v479_v63 = vmul.f32 %v1683_v3, %v478_v32  ;;  %1690 = vlog2.f32 %v2016_v0  ;;  %v1329_v3 = vand.u32 2147483647, %v2088_v61  ;;  %v1647_v47 = vunpack.i.l.bf16 %v2149_v20 }
 0x783   :  { %1401 = vmatpush.msra.mxu3 %v1642_v43  ;;  %v1291_v50 = vsub.f32 0.0, %v1289_v40 }
 0x784   :  { %v1331_v32 = vsub.f32 0.0, %v1329_v3 }
 0x785   :  { %v1685_v51 = vpop.eup %1684  ;;  %1402 = vmatpush.msra.mxu3 %v1643_v41 }
 0x786   :  { %v1687_v57 = vpop.eup %1686  ;;  %v467_v46 = vmul.f32 0.6931472, %v1685_v51  ;;  %v2210_v51 = vsub.f32 0.0, %v2092_v58  ;;  %v1656_v38 = vpop.permute.xlu2 %1655 }
 0x787   :  { %v476_v54 = vmul.f32 0.6931472, %v1687_v57  ;;  %v1689_v11 = vpop.eup %1688  ;;  %v1648_v57 = vunpack.i.h.bf16 %v2149_v20  ;;  %1403 = vmatpush.msra.mxu3 %v1647_v47  ;;  %v1657_v41 = vunpack.i.l.bf16 %v1656_v38 }
 0x788   :  { %v473_v60 = vsel %vm472_vm10, %v470_v44, %v467_v46  ;;  %v1691_v12 = vpop.eup %1690  ;;  %v2182_v35 = vmul.f32 0.6931472, %v1689_v11 }
 0x789   :  { %v482_v5 = vsel %vm481_vm11, %v479_v63, %v476_v54  ;;  %v483_v7 = vadd.f32 %v473_v60, %v451_v48  ;;  %v2186_v15 = vmul.f32 0.6931472, %v1691_v12  ;;  %v1651_v54 = vpop.permute.xlu0 %1650  ;;  %v1333_v63 = vmul.f32 1.442695, %v1331_v32  ;;  %1404 = vmatpush.msra.mxu3 %v1648_v57 }
 0x78a   :  { %v484_v53 = vadd.f32 %v482_v5, %v452_v59  ;;  %v1652_v48 = vunpack.i.l.bf16 %v1651_v54  ;;  %v1330_v59 = vand.u32 2147483647, %v2092_v58  ;;  %v1293_v60 = vmul.f32 1.442695, %v1291_v50 }
 0x78b   :  { %v2175_v8 = vsel %vm453_vm12, %v2156_v24, %v483_v7  ;;  %v1290_v5 = vand.u32 2147483647, %v2210_v51  ;;  %v1653_v7 = vunpack.i.h.bf16 %v1651_v54  ;;  %v1658_v32 = vunpack.i.h.bf16 %v1656_v38 }
 0x78c   :  { %v2178_v9 = vsel %vm454_vm13, %v2159_v25, %v484_v53  ;;  %1692 = vlog2.f32 %v2175_v8  ;;  %1405 = vmatpush.msra.mxu3 %v1652_v48  ;;  %vm1285_vm13 = vcmp.ne.f32.partialorder %v2202_v37, %v2202_v37 }
 0x78d   :  { %1694 = vlog2.f32 %v2178_v9 }
 0x78e   :  { %1696 = vpow2.f32 %v1539_v19  ;;  %1406 = vmatpush.msra.mxu3 %v1653_v7 }
 0x78f   :  { %1698 = vpow2.f32 %v1540_v22 }
 0x790   :  { %1407 = vmatpush.msra.mxu3 %v1657_v41 }
 0x792   :  { %v1693_v27 = vpop.eup %1692  ;;  %1408 = vmatpush.msra.mxu3 %v1658_v32  ;;  %v1323_v32 = vmax.f32 %v2088_v61, 0.0 }
 0x793   :  { %v1695_v13 = vpop.eup %1694  ;;  %v2184_v14 = vmul.f32 0.6931472, %v1693_v27  ;;  %v1332_v27 = vsub.f32 0.0, %v1330_v59 }
 0x794   :  { %v2188_v16 = vmul.f32 0.6931472, %v1695_v13  ;;  %v1697_v62 = vpop.eup %1696  ;;  %v1292_v13 = vsub.f32 0.0, %v1290_v5 }
 0x795   :  { %v1138_v17 = vsub.f32 %v2184_v14, %v2182_v35  ;;  %v796_v28 = vadd.f32 1.0, %v1697_v62  ;;  %v1699_v2 = vpop.eup %1698 }
 0x796   :  { %v1139_v18 = vsub.f32 %v2188_v16, %v2186_v15  ;;  %v2196_v30 = vadd.f32 1.0, %v1699_v2  ;;  %v1335_v2 = vmul.f32 1.442695, %v1332_v27  ;;  %v1295_v40 = vmul.f32 1.442695, %v1292_v13 }
 0x797   :  { %1700 = vrcp.f32 %v796_v28  ;;  %v809_v20 = vand.u32 2147483648, %v796_v28  ;;  %vm803_vm15 = vweird.f32 %v796_v28  ;;  %v807_v12 = vand.u32 2147483647, %v796_v28 }
 0x798   :  { %1702 = vrcp.f32 %v2196_v30  ;;  %vm818_vm8 = vweird.f32 %v2196_v30  ;;  %v822_v50 = vand.u32 2147483647, %v2196_v30 }
 0x799   :  { %1704 = vpow2.f32 %v1333_v63  ;;  %v810_v62 = vor.u32 1.1754944e-38, %v809_v20  ;;  %vm808_vm6 = vcmp.eq.f32.partialorder %v807_v12, 8.507059e+37 }
 0x79a   :  { %1706 = vpow2.f32 %v1293_v60  ;;  %vm823_vm10 = vcmp.eq.f32.partialorder %v822_v50, 8.507059e+37 }
 0x79b   :  { %1708 = vpow2.f32 %v1335_v2 }
 0x79c   :  { %1710 = vpow2.f32 %v1295_v40 }
 0x79d   :  { %v1701_v33 = vpop.eup %1700 }
 0x79e   :  { %v799_v42 = vmul.f32 %v1701_v33, %v796_v28  ;;  %v2206_v45 = vpop.eup %1702  ;;  %vm804_vm14 = vweird.f32 %v1701_v33 }
 0x79f   :  { %v814_v44 = vmul.f32 %v2206_v45, %v2196_v30  ;;  %vm805_vm1 = vmor %vm803_vm15, %vm804_vm14  ;;  %vm819_vm7 = vweird.f32 %v2206_v45  ;;  %v1705_v43 = vpop.eup %1704  ;;  %vm1325_vm14 = vcmp.ne.f32.partialorder %v2088_v61, %v2088_v61 }
 0x7a0   :  { %v800_v4 = vsub.f32 1.0, %v799_v42  ;;  %v1707_v47 = vpop.eup %1706  ;;  %vm820_vm9 = vmor %vm818_vm8, %vm819_vm7  ;;  %v1340_v7 = vmul.f32 -0.5, %v1705_v43  ;;  %vm1326_vm7 = vcmp.ne.f32.partialorder %v2092_v58, %v2092_v58 }
 0x7a1   :  { %v815_v11 = vsub.f32 1.0, %v814_v44  ;;  %v1297_v54 = vadd.f32 1.0, %v1707_v47  ;;  %v1709_v60 = vpop.eup %1708  ;;  %v1303_v13 = vand.u32 2147483647, %v1707_v47 }
 0x7a2   :  { %v801_v46 = vmul.f32 %v1701_v33, %v800_v4  ;;  %v1711_v5 = vpop.eup %1710  ;;  %v1341_v27 = vadd.f32 1.0, %v1340_v7  ;;  %v1349_v38 = vmul.f32 -0.5, %v1709_v60 }
 0x7a3   :  { %v816_v22 = vmul.f32 %v2206_v45, %v815_v11  ;;  %v1306_v11 = vadd.f32 1.0, %v1711_v5  ;;  %vm1304_vm11 = vcmp.lt.f32.partialorder %v1303_v13, 0.0004427343 }
 0x7a4   :  { %v802_v53 = vadd.f32 %v1701_v33, %v801_v46  ;;  %v1337_v46 = vadd.f32 1.0, %v1705_v43 }
 0x7a5   :  { %v817_v28 = vadd.f32 %v2206_v45, %v816_v22 }
 0x7a6   :  { %v806_v19 = vsel %vm805_vm1, %v1701_v33, %v802_v53  ;;  %v824_v33 = vand.u32 2147483648, %v2196_v30  ;;  %1712 = vlog2.f32 %v1337_v46  ;;  %v1300_v30 = vmul.f32 -0.5, %v1707_v47 }
 0x7a7   :  { %v811_v3 = vsel %vm808_vm6, %v810_v62, %v806_v19  ;;  %v821_v57 = vsel %vm820_vm9, %v2206_v45, %v817_v28  ;;  %1714 = vlog2.f32 %v1297_v54  ;;  %v1346_v53 = vadd.f32 1.0, %v1709_v60 }
 0x7a8   :  { %v825_v44 = vor.u32 1.1754944e-38, %v824_v33  ;;  %v1301_v12 = vadd.f32 1.0, %v1300_v30  ;;  %v1343_v19 = vand.u32 2147483647, %v1705_v43  ;;  %v1283_v33 = vmax.f32 %v2202_v37, 0.0 }
 0x7a9   :  { %1716 = vlog2.f32 %v1346_v53  ;;  %v1312_v54 = vand.u32 2147483647, %v1711_v5  ;;  %vm1286_vm6 = vcmp.ne.f32.partialorder %v2210_v51, %v2210_v51 }
 0x7aa   :  { %v826_v48 = vsel %vm823_vm10, %v825_v44, %v821_v57  ;;  %1718 = vlog2.f32 %v1306_v11  ;;  %v1302_v2 = vmul.f32 %v1707_v47, %v1301_v12  ;;  %vm1344_vm12 = vcmp.lt.f32.partialorder %v1343_v19, 0.0004427343 }
 0x7ab   :  { %v1350_v57 = vadd.f32 1.0, %v1349_v38  ;;  %vm1313_vm15 = vcmp.lt.f32.partialorder %v1312_v54, 0.0004427343  ;;  %v1284_v19 = vmax.f32 %v2210_v51, 0.0  ;;  %1720 = vlog2.f32 %v2137_v49  ;;  %v929_v49 = vld [vmem:[#allocation2 + $0x98] sm:$0xff] }
 0x7ac   :  { %v1713_v45 = vpop.eup %1712  ;;  %1722 = vlog2.f32 %v2140_v56 }
 0x7ad   :  { %v1715_v20 = vpop.eup %1714  ;;  %v1339_v62 = vmul.f32 0.6931472, %v1713_v45  ;;  %v1351_v53 = vmul.f32 %v1709_v60, %v1350_v57 }
 0x7ae   :  { %v1299_v22 = vmul.f32 0.6931472, %v1715_v20 }
 0x7af   :  { %v1717_v40 = vpop.eup %1716 }
 0x7b0   :  { %v1719_v41 = vpop.eup %1718 }
 0x7b1   :  { %v1308_v47 = vmul.f32 0.6931472, %v1719_v41  ;;  %v1116_v41 = vlaneseq }
 0x7b3   :  { %v2246_v57 = vand.u32 127, %v1116_v41 }
 0x7b5   :  { %vm1127_vm9 = vcmp.lt.s32.totalorder %v2246_v57, 12 }
 0x7ca   :  { %v784_v42 = vpop.f32.mrf.mxu2 }
 0x7cb   :  { %v828_v4 = vmul.f32 %v811_v3, %v784_v42  ;;  %v1342_v42 = vmul.f32 %v1705_v43, %v1341_v27  ;;  %v1309_v3 = vmul.f32 -0.5, %v1711_v5  ;;  %v1348_v43 = vmul.f32 0.6931472, %v1717_v40 }
 0x7cd   :  { %1541 = vmatmul.msk.f32.vlgmr.msrb.gmra.mxu3 %vm229_vm4, %v828_v4  ;;  %v1305_v4 = vsel %vm1304_vm11, %v1302_v2, %v1299_v22  ;;  %v1345_v28 = vsel %vm1344_vm12, %v1342_v42, %v1339_v62  ;;  %v1310_v50 = vadd.f32 1.0, %v1309_v3  ;;  %v1324_v22 = vmax.f32 %v2092_v58, 0.0 }
 0x7ce   :  { %v1315_v46 = vadd.f32 %v1305_v4, %v1283_v33  ;;  %v1355_v44 = vadd.f32 %v1345_v28, %v1323_v32  ;;  %v2244_v28 = vpop.f32.mrf.mxu3  ;;  %v1117_v33 = vshrl.u32 %v1116_v41, 7 }
 0x7cf   :  { %v1311_v7 = vmul.f32 %v1711_v5, %v1310_v50 }
 0x7d0   :  { %v1317_v11 = vsel %vm1285_vm13, %v2202_v37, %v1315_v46  ;;  %v1357_v45 = vsel %vm1325_vm14, %v2088_v61, %v1355_v44  ;;  %v1118_v32 = vadd.s32 8, %v1117_v33  ;;  %v1835_v46 = vmov 0.0  }
 0x7d1   :  { %v1314_v27 = vsel %vm1313_vm15, %v1311_v7, %v1308_v47 }
 0x7d2   :  { %v787_v63 = vpop.f32.mrf.mxu2  ;;  %v1316_v2 = vadd.f32 %v1314_v27, %v1284_v19  ;;  %vm1120_vm8 = vcmp.lt.s32.totalorder %v1118_v32, 12 }
 0x7d3   :  { %v829_v59 = vmul.f32 %v826_v48, %v787_v63  ;;  %v1352_v63 = vand.u32 2147483647, %v1709_v60  ;;  %v2254_v44 = vsel %vm1120_vm8, 1.0, %v1835_v46 }
 0x7d4   :  { %v1318_v37 = vsel %vm1286_vm6, %v2210_v51, %v1316_v2  ;;  %v1764_v51 = vld [vmem:[%s2434_s0] sm:$0xff] }
 0x7d5   :  { %1542 = vmatmul.msk.f32.gmra.mxu3 %vm229_vm4, %v829_v59  ;;  %vm1353_vm1 = vcmp.lt.f32.partialorder %v1352_v63, 0.0004427343  ;;  %v1550_v63 = vsel %vm1127_vm9, 1.0, %v1835_v46  ;;  %vm1444_vm9 = vcmask 7168  }
 0x7d6   :  { %v1354_v13 = vsel %vm1353_vm1, %v1351_v53, %v1348_v43  ;;  %v1765_v43 = vld [vmem:[%s2434_s0 + $0x8] sm:$0xff]  ;;  %s1836_s0 = smov 124  }
 0x7d7   :  { %v1356_v42 = vadd.f32 %v1354_v13, %v1324_v22 }
 0x7d9   :  { %v1358_v3 = vsel %vm1326_vm7, %v2092_v58, %v1356_v42 }
 0x7e6   :  { %v1273_v48 = vpop.f32.mrf.mxu2 }
 0x7e7   :  { %v1279_v59 = vmul.f32 2.0, %v1273_v48  ;;  %v1321_v30 = vsub.f32 1.0, %v1273_v48 }
 0x7e9   :  { %v1319_v20 = vmul.f32 %v1317_v11, %v1279_v59  ;;  %v1359_v12 = vmul.f32 %v1357_v45, %v1321_v30  ;;  %v1464_v59 = vmul.f32 %v1550_v63, %v2254_v44 }
 0x7eb   :  { %v1361_v62 = vadd.f32 %v1359_v12, %v1319_v20  ;;  %v1721_v12 = vpop.eup %1720 }
 0x7ec   :  { %v753_v27 = vmul.f32 0.6931472, %v1721_v12  ;;  %v1723_v19 = vpop.eup %1722 }
 0x7ed   :  { %1555 = vmatmul.msk.f32.vlgmr.msra.gmra.mxu3 %vm229_vm4, %v1361_v62  ;;  %v755_v2 = vmul.f32 0.6931472, %v1723_v19 }
 0x7ee   :  { %v1276_v60 = vpop.f32.mrf.mxu2  ;;  %v756_v13 = vsub.f32 %v2112_v36, %v753_v27  ;;  %v1143_v36 = vsub.f32 %v2001_v26, %v2159_v25 }
 0x7ef   :  { %v1280_v5 = vmul.f32 2.0, %v1276_v60  ;;  %v1322_v61 = vsub.f32 1.0, %v1276_v60  ;;  %v757_v42 = vsub.f32 %v2115_v39, %v755_v2 }
 0x7f1   :  { %v1320_v38 = vmul.f32 %v1318_v37, %v1280_v5  ;;  %v1360_v40 = vmul.f32 %v1358_v3, %v1322_v61  ;;  %v931_v5 = vld [vmem:[#allocation2 + $0x138] sm:$0xff]  ;;  %v930_v61 = vld [vmem:[#allocation2 + $0xe8] sm:$0xff]  ;;  %v1145_v3 = vmul.f32 %v1143_v36, %v1143_v36 }
 0x7f2   :  { %951 = vmatpush.msra.mxu0 %v931_v5 }
 0x7f3   :  { %v1362_v4 = vadd.f32 %v1360_v40, %v1320_v38  ;;  %v228_v38 = vpop.permute.xlu0 %227 }
 0x7f4   :  { %952 = vmatpush.msra.mxu0 %v930_v61  ;;  %v2281_v39 = vsel %vm229_vm4, %v1965_v55, %v228_v38 }
 0x7f5   :  { %1556 = vmatmul.msk.f32.gmra.mxu3 %vm229_vm4, %v1362_v4  ;;  %v2285_v40 = vadd.f32 %v2043_v23, %v2281_v39  ;;  %v928_v4 = vld [vmem:[#allocation2 + $0x48] sm:$0xff]  ;;  %v1157_v23 = vmul.f32 %v2178_v9, %v2178_v9 }
 0x7f6   :  { %953 = vmatpush.msra.mxu0 %v929_v49 }
 0x7f7   :  { %1724 = vrcp.f32 %v1157_v23 }
 0x7f8   :  { %954 = vmatpush.msra.mxu0 %v928_v4 }
 0x850   :  { %v877_v50 = vpop.f32.mrf.mxu3 }
 0x851   :  { %1543 = vmatmul.msk.f32.vlgmr.msra.gmra.mxu1 %vm71_vm0, %v877_v50  ;;  %v1459_v58 = vsub.f32 %v1764_v51, %v877_v50  ;;  %v1725_v51 = vpop.eup %1724 }
 0x853   :  { %v1461_v54 = vmul.f32 %v1459_v58, %v1459_v58  ;;  %v1141_v58 = vmul.f32 %v2016_v0, %v2016_v0 }
 0x855   :  { %v1465_v30 = vmul.f32 %v1550_v63, %v1461_v54  ;;  %v1161_v63 = vmul.f32 0.5, %v1725_v51 }
 0x857   :  { %v1467_v11 = vsel %vm71_vm0, %v1465_v30, 0.0 }
 0x858   :  { %v880_v47 = vpop.f32.mrf.mxu3 }
 0x859   :  { %v1460_v48 = vsub.f32 %v1765_v43, %v880_v47  ;;  %1544 = vmatmul.msk.f32.gmra.mxu1 %vm71_vm0, %v880_v47 }
 0x85b   :  { %v1462_v7 = vmul.f32 %v1460_v48, %v1460_v48 }
 0x85d   :  { %v1466_v53 = vmul.f32 %v1464_v59, %v1462_v7 }
 0x85f   :  { %v1468_v45 = vsel %vm71_vm0, %v1466_v53, 0.0 }
 0x860   :  { %v2264_v20 = vadd.f32 %v1468_v45, %v1467_v11 }
 0x870   :  { %v1410_v22 = vpop.f32.mrf.mxu3 }
 0x871   :  { %v2269_v62 = vsub.f32 %v756_v13, %v1410_v22 }
 0x878   :  { %v1413_v60 = vpop.f32.mrf.mxu3 }
 0x879   :  { %v2272_v37 = vsub.f32 %v757_v42, %v1413_v60 }
 0x87b   :  { %v1421_v56 = vsel %vm106_vm2, %v2272_v37, -inf }
 0x87c   :  { %1422 = vmax.xlane.f32.xlu0 %v1421_v56 }
 0x890   :  { %1150 = vrot.lane.b32.xlu0 %v1145_v3, %s1827_s22 }
 0x898   :  { %1064 = vrot.lane.b32.xlu0 %v2285_v40, %s1828_s10 }
 0x8ce   :  { %v920_v41 = vpop.f32.mrf.mxu1 }
 0x8cf   :  { %v921_v26 = vadd.f32 %v920_v41, %v2198_v34 }
 0x8d1   :  { %v926_v25 = vmax.f32 %v921_v26, 0.0 }
 0x8d3   :  { %1545 = vmatmul.msk.f32.vlgmr.msra.gmra.mxu0 %vm174_vm3, %v926_v25 }
 0x8d6   :  { %v923_v33 = vpop.f32.mrf.mxu1 }
 0x8d7   :  { %v924_v32 = vadd.f32 %v923_v33, %v2198_v34 }
 0x8d9   :  { %v927_v55 = vmax.f32 %v924_v32, 0.0 }
 0x8db   :  { %1546 = vmatmul.msk.f32.gmra.mxu0 %vm174_vm3, %v927_v55 }
 0x8ef   :  { %v2295_v50 = vpop.xlane.xlu0 %1422 }
 0x902   :  { %v1151_v54 = vpop.permute.xlu0 %1150 }
 0x903   :  { %v1155_v47 = vadd.f32 %v1151_v54, %v1141_v58 }
 0x905   :  { %v1163_v43 = vmul.f32 %v1161_v63, %v1155_v47 }
 0x907   :  { %v2302_v34 = vadd.f32 %v1163_v43, %v1139_v18 }
 0x950   :  { %v956_v48 = vpop.f32.mrf.mxu0 }
 0x951   :  { %v2305_v59 = vadd.f32 %v2105_v31, %v956_v48  ;;  %v1142_v48 = vsub.f32 %v1998_v21, %v2156_v24  ;;  %v1766_v21 = vld [vmem:[%s2435_s1] sm:$0xff] }
 0x953   :  { %v968_v9 = vand.u32 2147483647, %v2305_v59  ;;  %vm964_vm10 = vcmp.ne.f32.partialorder %v2305_v59, %v2305_v59  ;;  %v1198_v24 = vsub.f32 %v1766_v21, %v2305_v59 }
 0x955   :  { %v970_v30 = vsub.f32 0.0, %v968_v9  ;;  %v1144_v9 = vmul.f32 %v1142_v48, %v1142_v48  ;;  %v2381_v48 = vadd.f32 %v2164_v1, %v1985_v6 }
 0x957   :  { %v972_v7 = vmul.f32 1.442695, %v970_v30  ;;  %v284_v30 = vadd.f32 %v2045_v29, %v2281_v39  ;;  %v1007_v39 = vpop.permute.xlu1 %1006 }
 0x958   :  { %v959_v53 = vpop.f32.mrf.mxu0 }
 0x959   :  { %1726 = vpow2.f32 %v972_v7  ;;  %v2309_v0 = vadd.f32 %v2105_v31, %v959_v53  ;;  %v962_v31 = vmax.f32 %v2305_v59, 0.0  ;;  %v1418_v7 = vsel %vm106_vm2, %v2269_v62, -inf }
 0x95b   :  { %v969_v11 = vand.u32 2147483647, %v2309_v0  ;;  %v963_v33 = vmax.f32 %v2309_v0, 0.0  ;;  %vm965_vm12 = vcmp.ne.f32.partialorder %v2309_v0, %v2309_v0 }
 0x95d   :  { %v971_v45 = vsub.f32 0.0, %v969_v11  ;;  %v1767_v11 = vld [vmem:[%s2435_s1 + $0x8] sm:$0xff] }
 0x95f   :  { %v1727_v12 = vpop.eup %1726  ;;  %v974_v15 = vmul.f32 1.442695, %v971_v45 }
 0x960   :  { %v976_v16 = vadd.f32 1.0, %v1727_v12  ;;  %v979_v18 = vmul.f32 -0.5, %v1727_v12  ;;  %v982_v13 = vand.u32 2147483647, %v1727_v12 }
 0x961   :  { %1728 = vpow2.f32 %v974_v15 }
 0x962   :  { %1730 = vlog2.f32 %v976_v16  ;;  %v980_v27 = vadd.f32 1.0, %v979_v18  ;;  %vm983_vm4 = vcmp.lt.f32.partialorder %v982_v13, 0.0004427343  ;;  %v1156_v16 = vmul.f32 %v2175_v8, %v2175_v8 }
 0x964   :  { %v981_v60 = vmul.f32 %v1727_v12, %v980_v27  ;;  %v1140_v27 = vmul.f32 %v2008_v52, %v2008_v52  ;;  %v1425_v52 = vsub.f32 %v2272_v37, %v2295_v50 }
 0x967   :  { %v1729_v19 = vpop.eup %1728 }
 0x968   :  { %v1731_v22 = vpop.eup %1730  ;;  %v985_v2 = vadd.f32 1.0, %v1729_v19  ;;  %v988_v5 = vmul.f32 -0.5, %v1729_v19  ;;  %v991_v3 = vand.u32 2147483647, %v1729_v19 }
 0x969   :  { %v978_v42 = vmul.f32 0.6931472, %v1731_v22 }
 0x96a   :  { %1732 = vlog2.f32 %v985_v2  ;;  %v989_v56 = vadd.f32 1.0, %v988_v5  ;;  %vm992_vm11 = vcmp.lt.f32.partialorder %v991_v3, 0.0004427343 }
 0x96b   :  { %v984_v61 = vsel %vm983_vm4, %v981_v60, %v978_v42  ;;  %vm1490_vm4 = vcmp.eq.s32.totalorder %v2246_v57, 2 }
 0x96c   :  { %v994_v49 = vadd.f32 %v984_v61, %v962_v31  ;;  %v990_v25 = vmul.f32 %v1729_v19, %v989_v56  ;;  %v1552_v56 = vadd.f32 -0.5, %v2302_v34 }
 0x96e   :  { %v996_v36 = vsel %vm964_vm10, %v2305_v59, %v994_v49  ;;  %v1428_v49 = vmul.f32 1.442695, %v1425_v52 }
 0x96f   :  { %v2316_v38 = vadd.f32 1e-06, %v996_v36 }
 0x970   :  { %v1733_v4 = vpop.eup %1732 }
 0x971   :  { %v1202_v41 = vmul.f32 %v2316_v38, %v2316_v38  ;;  %v987_v26 = vmul.f32 0.6931472, %v1733_v4 }
 0x973   :  { %1734 = vrcp.f32 %v1202_v41  ;;  %v993_v32 = vsel %vm992_vm11, %v990_v25, %v987_v26 }
 0x974   :  { %v995_v55 = vadd.f32 %v993_v32, %v963_v33 }
 0x976   :  { %v997_v23 = vsel %vm965_vm12, %v2309_v0, %v995_v55 }
 0x977   :  { %v2324_v51 = vadd.f32 1e-06, %v997_v23 }
 0x979   :  { %v1735_v58 = vpop.eup %1734  ;;  %v1203_v54 = vmul.f32 %v2324_v51, %v2324_v51 }
 0x97a   :  { %v1206_v63 = vmul.f32 0.5, %v1735_v58 }
 0x97b   :  { %1736 = vrcp.f32 %v1203_v54 }
 0x97c   :  { %1210 = vrot.lane.b32.xlu2 %v1206_v63, %s1836_s0  ;;  %1738 = vrcp.f32 %v1156_v16 }
 0x981   :  { %v1737_v47 = vpop.eup %1736 }
 0x982   :  { %v1207_v43 = vmul.f32 0.5, %v1737_v47  ;;  %v1739_v18 = vpop.eup %1738 }
 0x983   :  { %v1160_v19 = vmul.f32 0.5, %v1739_v18 }
 0x984   :  { %1212 = vrot.lane.b32.xlu1 %v1207_v43, %s1836_s0 }
 0x98c   :  { %1008 = vrot.lane.b32.xlu1 %v2244_v28, %s1828_s10  ;;  %v1200_v28 = vmul.f32 %v1198_v24, %v1198_v24 }
 0x994   :  { %1148 = vrot.lane.b32.xlu1 %v1144_v9, %s1827_s22  ;;  %s1837_s22 = smov 4  }
 0x99c   :  { %1020 = vrot.lane.b32.xlu1 %v284_v30, %s1831_s7 }
 0x9a5   :  { %1419 = vmax.xlane.f32.xlu2 %v1418_v7 }
 0x9bd   :  { %1018 = vrot.lane.b32.xlu2 %v2285_v40, %s1831_s7  ;;  %v1199_v40 = vsub.f32 %v1767_v11, %v2309_v0 }
 0x9bf   :  { %v1201_v45 = vmul.f32 %v1199_v40, %v1199_v40 }
 0x9c5   :  { %1066 = vrot.lane.b32.xlu2 %v284_v30, %s1828_s10 }
 0x9d6   :  { %v1211_v53 = vpop.permute.xlu2 %1210 }
 0x9d7   :  { %v1216_v29 = vmul.f32 %v1211_v53, %v1200_v28 }
 0x9d9   :  { %1220 = vrot.lane.b32.xlu1 %v1216_v29, %s1837_s22 }
 0x9f6   :  { %v1213_v12 = vpop.permute.xlu1 %1212 }
 0x9f7   :  { %v1217_v15 = vmul.f32 %v1213_v12, %v1201_v45 }
 0x9f9   :  { %1222 = vrot.lane.b32.xlu1 %v1217_v15, %s1837_s22 }
 0x9fe   :  { %v1009_v59 = vpop.permute.xlu1 %1008 }
 0x9ff   :  { %v1011_v42 = vsel %vm298_vm5, %v1007_v39, %v1009_v59 }
 0xa00   :  { %v2360_v60 = vadd.f32 %v1011_v42, %v1990_v10 }
 0xa06   :  { %v1149_v13 = vpop.permute.xlu1 %1148 }
 0xa07   :  { %v1154_v22 = vadd.f32 %v1149_v13, %v1140_v27 }
 0xa09   :  { %v1162_v2 = vmul.f32 %v1160_v19, %v1154_v22 }
 0xa0b   :  { %v1164_v0 = vadd.f32 %v1162_v2, %v1138_v17 }
 0xa0d   :  { %v1551_v8 = vadd.f32 -0.5, %v1164_v0 }
 0xa0e   :  { %v1021_v5 = vpop.permute.xlu1 %1020 }
 0xa0f   :  { %v1025_v31 = vadd.f32 %v1021_v5, %v2360_v60  ;;  %1170 = vrot.lane.b32.xlu2 %v1551_v8, %s1830_s23  ;;  %v1065_v8 = vpop.permute.xlu0 %1064 }
 0xa11   :  { %v1548_v61 = vmul.f32 -1.442695, %v1025_v31 }
 0xa13   :  { %1740 = vpow2.f32 %v1548_v61 }
 0xa14   :  { %1742 = vpow2.f32 %v1428_v49 }
 0xa17   :  { %1172 = vrot.lane.b32.xlu2 %v1552_v56, %s1830_s23 }
 0xa18   :  { %v2368_v35 = vpop.xlane.xlu2 %1419 }
 0xa19   :  { %v1741_v10 = vpop.eup %1740  ;;  %v1424_v14 = vsub.f32 %v2269_v62, %v2368_v35 }
 0xa1a   :  { %v1033_v17 = vadd.f32 1.0, %v1741_v10  ;;  %v1743_v3 = vpop.eup %1742 }
 0xa1b   :  { %v1426_v36 = vmul.f32 1.442695, %v1424_v14  ;;  %v1433_v4 = vsel %vm106_vm2, %v1743_v3, 0.0 }
 0xa1c   :  { %1744 = vrcp.f32 %v1033_v17  ;;  %v1060_v62 = vand.u32 2147483648, %v1033_v17  ;;  %vm1054_vm13 = vweird.f32 %v1033_v17  ;;  %v1058_v23 = vand.u32 2147483647, %v1033_v17 }
 0xa1d   :  { %1746 = vpow2.f32 %v1426_v36 }
 0xa1e   :  { %v1061_v54 = vor.u32 1.1754944e-38, %v1060_v62  ;;  %vm1059_vm15 = vcmp.eq.f32.partialorder %v1058_v23, 8.507059e+37  ;;  %1748 = vlog2.f32 %v2316_v38 }
 0xa20   :  { %v1019_v32 = vpop.permute.xlu2 %1018 }
 0xa21   :  { %v1024_v9 = vadd.f32 %v1019_v32, %v2381_v48 }
 0xa22   :  { %v1745_v37 = vpop.eup %1744 }
 0xa23   :  { %v1747_v41 = vpop.eup %1746  ;;  %1434 = vadd.xlane.f32.xlu1 %v1433_v4  ;;  %v1050_v26 = vmul.f32 %v1745_v37, %v1033_v17  ;;  %vm1055_vm5 = vweird.f32 %v1745_v37  ;;  %v1547_v7 = vmul.f32 -1.442695, %v1024_v9 }
 0xa24   :  { %v1430_v34 = vsel %vm106_vm2, %v1747_v41, 0.0  ;;  %vm1056_vm14 = vmor %vm1054_vm13, %vm1055_vm5  ;;  %v1749_v30 = vpop.eup %1748 }
 0xa25   :  { %1431 = vadd.xlane.f32.xlu0 %v1430_v34  ;;  %v1051_v25 = vsub.f32 1.0, %v1050_v26  ;;  %v1193_v21 = vmul.f32 0.6931472, %v1749_v30  ;;  %1750 = vpow2.f32 %v1547_v7 }
 0xa27   :  { %v1052_v33 = vmul.f32 %v1745_v37, %v1051_v25  ;;  %v1196_v24 = vadd.f32 0.9189385, %v1193_v21 }
 0xa28   :  { %v1067_v47 = vpop.permute.xlu2 %1066 }
 0xa29   :  { %v1053_v55 = vadd.f32 %v1745_v37, %v1052_v33 }
 0xa2b   :  { %v1057_v58 = vsel %vm1056_vm14, %v1745_v37, %v1053_v55  ;;  %v1751_v29 = vpop.eup %1750 }
 0xa2c   :  { %v2374_v63 = vsel %vm1059_vm15, %v1061_v54, %v1057_v58  ;;  %v1032_v39 = vadd.f32 1.0, %v1751_v29 }
 0xa2d   :  { %v1071_v43 = vmul.f32 %v1067_v47, %v2374_v63 }
 0xa2e   :  { %1752 = vrcp.f32 %v1032_v39  ;;  %v1045_v18 = vand.u32 2147483648, %v1032_v39  ;;  %vm1039_vm6 = vweird.f32 %v1032_v39  ;;  %v1043_v13 = vand.u32 2147483647, %v1032_v39 }
 0xa2f   :  { %1754 = vlog2.f32 %v2324_v51 }
 0xa30   :  { %v1046_v22 = vor.u32 1.1754944e-38, %v1045_v18  ;;  %vm1044_vm8 = vcmp.eq.f32.partialorder %v1043_v13, 8.507059e+37 }
 0xa34   :  { %v1753_v11 = vpop.eup %1752 }
 0xa35   :  { %v1035_v38 = vmul.f32 %v1753_v11, %v1032_v39  ;;  %v1755_v1 = vpop.eup %1754  ;;  %vm1040_vm1 = vweird.f32 %v1753_v11 }
 0xa36   :  { %v1195_v40 = vmul.f32 0.6931472, %v1755_v1  ;;  %vm1041_vm7 = vmor %vm1039_vm6, %vm1040_vm1 }
 0xa37   :  { %v1036_v6 = vsub.f32 1.0, %v1035_v38 }
 0xa38   :  { %v1197_v15 = vadd.f32 0.9189385, %v1195_v40 }
 0xa39   :  { %v1037_v45 = vmul.f32 %v1753_v11, %v1036_v6 }
 0xa3b   :  { %v1038_v16 = vadd.f32 %v1753_v11, %v1037_v45 }
 0xa3c   :  { %1076 = vrot.lane.b32.xlu1 %v1071_v43, %s1829_s17 }
 0xa3d   :  { %v1042_v19 = vsel %vm1041_vm7, %v1753_v11, %v1038_v16 }
 0xa3e   :  { %v2387_v2 = vsel %vm1044_vm8, %v1046_v22, %v1042_v19 }
 0xa3f   :  { %v1070_v31 = vmul.f32 %v1065_v8, %v2387_v2 }
 0xa4b   :  { %v1221_v28 = vpop.permute.xlu1 %1220 }
 0xa4c   :  { %v1226_v53 = vadd.f32 %v1221_v28, %v1196_v24 }
 0xa4e   :  { %1230 = vrot.lane.b32.xlu2 %v1226_v53, %s1836_s0 }
 0xa69   :  { %v1171_v12 = vpop.permute.xlu2 %1170 }
 0xa6a   :  { %v1176_v42 = vsel %vm71_vm0, %v1171_v12, 0.0 }
 0xa6b   :  { %v1223_v59 = vpop.permute.xlu1 %1222 }
 0xa6c   :  { %v1227_v27 = vadd.f32 %v1223_v59, %v1197_v15 }
 0xa6e   :  { %1232 = vrot.lane.b32.xlu2 %v1227_v27, %s1836_s0 }
 0xa71   :  { %v1173_v51 = vpop.permute.xlu2 %1172 }
 0xa72   :  { %v1177_v0 = vsel %vm71_vm0, %v1173_v51, 0.0  ;;  %vm1481_vm0 = vcmp.eq.s32.totalorder %v2246_v57, 0 }
 0xa73   :  { %v1178_v5 = vadd.f32 %v1177_v0, %v1176_v42 }
 0xa75   :  { %1179 = vadd.xlane.f32.xlu0 %v1178_v5  ;;  %v1084_v5 = vsub.f32 1.0, %v2387_v2 }
 0xa76   :  { %1074 = vrot.lane.b32.xlu2 %v1070_v31, %s1829_s17 }
 0xa96   :  { %v1435_v52 = vpop.xlane.xlu1 %1434 }
 0xa97   :  { %1756 = vlog2.f32 %v1435_v52 }
 0xa98   :  { %v1432_v61 = vpop.xlane.xlu0 %1431 }
 0xa99   :  { %1758 = vlog2.f32 %v1432_v61 }
 0xa9d   :  { %v1757_v49 = vpop.eup %1756 }
 0xa9e   :  { %v1439_v56 = vmul.f32 0.6931472, %v1757_v49 }
 0xa9f   :  { %v1759_v10 = vpop.eup %1758 }
 0xaa0   :  { %v1441_v14 = vadd.f32 %v1439_v56, %v2295_v50  ;;  %v1437_v17 = vmul.f32 0.6931472, %v1759_v10 }
 0xaa2   :  { %v1440_v36 = vadd.f32 %v1437_v17, %v2368_v35  ;;  %v1443_v3 = vmul.f32 %v2254_v44, %v1441_v14  ;;  %v1768_v35 = vld [vmem:[%s2436_s2] sm:$0xff]  ;;  %v1769_v44 = vld [vmem:[%s2436_s2 + $0x8] sm:$0xff] }
 0xaa4   :  { %v1445_v37 = vsel %vm1444_vm9, %v1440_v36, 0.0  ;;  %v1446_v4 = vsel %vm1444_vm9, %v1443_v3, 0.0  ;;  %v1557_v36 = vsel %vm1481_vm0, 1.0, %v1835_v46 }
 0xaa5   :  { %v1447_v41 = vadd.f32 %v1446_v4, %v1445_v37 }
 0xaa7   :  { %1448 = vadd.xlane.f32.xlu0 %v1447_v41  ;;  %v1559_v41 = vsel %vm1490_vm4, 1.0, %v1835_v46 }
 0xaa8   :  { %v1231_v50 = vpop.permute.xlu2 %1230 }
 0xaae   :  { %v1077_v34 = vpop.permute.xlu1 %1076 }
 0xaaf   :  { %v1081_v26 = vadd.f32 %v1077_v34, %v2360_v60  ;;  %1470 = vadd.xlane.f32.xlu0 %v2264_v20  ;;  %v1236_v20 = vsel %vm106_vm2, %v1231_v50, 0.0 }
 0xab1   :  { %1760 = vtanh.f32 %v1081_v26 }
 0xab7   :  { %v1761_v25 = vpop.eup %1760 }
 0xab8   :  { %1090 = vrot.lane.b32.xlu1 %v1761_v25, %s1828_s10 }
 0xac0   :  { %1096 = vrot.lane.b32.xlu1 %v1768_v35, %s1829_s17 }
 0xac8   :  { %1098 = vrot.lane.b32.xlu1 %v1769_v44, %s1829_s17  ;;  %v1233_v60 = vpop.permute.xlu2 %1232 }
 0xac9   :  { %v1237_v33 = vsel %vm106_vm2, %v1233_v60, 0.0  ;;  %vm1485_vm2 = vcmp.eq.s32.totalorder %v2246_v57, 1 }
 0xaca   :  { %v1238_v32 = vadd.f32 %v1237_v33, %v1236_v20  ;;  %v1558_v37 = vsel %vm1485_vm2, 1.0, %v1835_v46 }
 0xacc   :  { %1239 = vadd.xlane.f32.xlu2 %v1238_v32 }
 0xad0   :  { %v1075_v55 = vpop.permute.xlu2 %1074 }
 0xad1   :  { %v1080_v62 = vadd.f32 %v1075_v55, %v2381_v48  ;;  %v1085_v48 = vsub.f32 1.0, %v2374_v63 }
 0xad3   :  { %1762 = vtanh.f32 %v1080_v62 }
 0xad9   :  { %v1763_v23 = vpop.eup %1762 }
 0xada   :  { %1088 = vrot.lane.b32.xlu0 %v1763_v23, %s1828_s10 }
 0xae8   :  { %v1180_v58 = vpop.xlane.xlu0 %1179 }
 0xae9   :  { %v1181_v54 = vrot.slane %v1180_v58, 4 }
 0xaeb   :  { %v1182_v47 = vadd.f32 %v1181_v54, %v1180_v58 }
 0xaed   :  { %v1183_v43 = vrot.slane %v1182_v47, 2 }
 0xaef   :  { %v1184_v9 = vadd.f32 %v1183_v43, %v1182_v47 }
 0xaf1   :  { %v1185_v30 = vrot.slane %v1184_v9, 1 }
 0xaf3   :  { %v1186_v7 = vadd.f32 %v1185_v30, %v1184_v9 }
 0xaf5   :  { %1560 = vpush %v1186_v7 }
 0xb1a   :  { %v1449_v24 = vpop.xlane.xlu0 %1448 }
 0xb1b   :  { %v1450_v29 = vrot.slane %v1449_v24, 4 }
 0xb1d   :  { %v1451_v38 = vadd.f32 %v1450_v29, %v1449_v24 }
 0xb1f   :  { %v1452_v12 = vrot.slane %v1451_v38, 2 }
 0xb21   :  { %v1453_v27 = vadd.f32 %v1452_v12, %v1451_v38 }
 0xb22   :  { %v1471_v53 = vpop.xlane.xlu0 %1470 }
 0xb23   :  { %v1472_v39 = vrot.slane %v1471_v53, 4  ;;  %v1454_v51 = vrot.slane %v1453_v27, 1 }
 0xb25   :  { %v1473_v40 = vadd.f32 %v1472_v39, %v1471_v53 }
 0xb26   :  { %s1561_s2 = spop %1560 }
 0xb27   :  { %v1474_v16 = vrot.slane %v1473_v40, 2  ;;  %v1188_v10 = vstv %s1561_s2 }
 0xb28   :  { %v1189_v17 = vmul.f32 0.5, %v1188_v10 }
 0xb29   :  { %v1475_v19 = vadd.f32 %v1474_v16, %v1473_v40 }
 0xb2a   :  { %v1091_v21 = vpop.permute.xlu1 %1090  ;;  %v1484_v26 = vmul.f32 %v1557_v36, %v1189_v17 }
 0xb2b   :  { %v1095_v6 = vmul.f32 %v1091_v21, %v1085_v48  ;;  %v1476_v0 = vrot.slane %v1475_v19, 1 }
 0xb2d   :  { %v1477_v52 = vadd.f32 %v1476_v0, %v1475_v19 }
 0xb32   :  { %v1097_v28 = vpop.permute.xlu1 %1096 }
 0xb33   :  { %v1102_v61 = vmul.f32 %v1097_v28, %v2387_v2 }
 0xb3a   :  { %v1099_v11 = vpop.permute.xlu1 %1098 }
 0xb3b   :  { %v1103_v1 = vmul.f32 %v1099_v11, %v2374_v63  ;;  %v1455_v63 = vadd.f32 %v1454_v51, %v1453_v27 }
 0xb3d   :  { %v1105_v45 = vadd.f32 %v1103_v1, %v1095_v6 }
 0xb3f   :  { %1110 = vrot.lane.b32.xlu2 %v1105_v45, %s1829_s17  ;;  %v1240_v15 = vpop.xlane.xlu2 %1239 }
 0xb40   :  { %v1241_v59 = vrot.slane %v1240_v15, 4 }
 0xb42   :  { %v1242_v18 = vadd.f32 %v1241_v59, %v1240_v15 }
 0xb44   :  { %v1243_v13 = vrot.slane %v1242_v18, 2 }
 0xb46   :  { %v1244_v22 = vadd.f32 %v1243_v13, %v1242_v18 }
 0xb48   :  { %v1245_v42 = vrot.slane %v1244_v22, 1 }
 0xb4a   :  { %v1246_v8 = vadd.f32 %v1245_v42, %v1244_v22 }
 0xb4c   :  { %v1089_v31 = vpop.permute.xlu0 %1088  ;;  %1562 = vpush %v1246_v8 }
 0xb4d   :  { %v1094_v49 = vmul.f32 %v1089_v31, %v1084_v5  ;;  %1564 = vpush %v1455_v63 }
 0xb4e   :  { %1566 = vpush %v1477_v52 }
 0xb4f   :  { %v1104_v56 = vadd.f32 %v1102_v61, %v1094_v49 }
 0xb51   :  { %1108 = vrot.lane.b32.xlu0 %v1104_v56, %s1829_s17 }
 0xb7d   :  { %s1563_s10 = spop %1562 }
 0xb7e   :  { %s1565_s7 = spop %1564  ;;  %v1493_v34 = vstv %s1563_s10 }
 0xb7f   :  { %v1457_v14 = vstv %s1565_s7  ;;  %s1567_s24 = spop %1566  ;;  %v1494_v50 = vmul.f32 %v1559_v41, %v1493_v34 }
 0xb80   :  { %v1458_v2 = vsub.f32 0.0, %v1457_v14  ;;  %v1479_v3 = vstv %s1567_s24 }
 0xb82   :  { %v1480_v4 = vadd.f32 %v1479_v3, %v1458_v2 }
 0xb84   :  { %v1488_v25 = vmul.f32 %v1558_v37, %v1480_v4 }
 0xb86   :  { %v1489_v35 = vadd.f32 %v1488_v25, %v1484_v26 }
 0xb88   :  { %v1495_v44 = vadd.f32 %v1494_v50, %v1489_v35 }
 0xb8a   :  { %1496 = vst [vmem:[%s2443_s9] sm:$0x1] %v1495_v44 }
 0xb99   :  { %v1111_v57 = vpop.permute.xlu2 %1110 }
 0xb9a   :  { %1115 = vst.msk [vmem:[%s2442_s8 + $0x8] sm:$0xff] %vm174_vm3, %v1111_v57 }
 0xbc3   :  { %v1109_v60 = vpop.permute.xlu0 %1108 }
 0xbc4   :  { %1114 = vst.msk [vmem:[%s2442_s8] sm:$0xff] %vm174_vm3, %v1109_v60 }
 0xbc5   :  { %1505 = vsyncpa [#allocation3], 1 }
 0xbc6   :  { %1506 = vsyncpa [#allocation5], 1 }

</bundles_post_ra>
